<compile_context>
chip_gen: v7x
topology: tpu7x:2x2x1
jax: 0.10.0
libtpu: 0.0.40
codegen_flags: <defaults>
</compile_context>

<pallas_src>
import functools

import jax
import jax.numpy as jnp
from jax import lax
from jax.experimental import pallas as pl
from jax.experimental.pallas import tpu as pltpu

EMBED_DIM = 256
NUM_HEADS = 8
HEAD_DIM = EMBED_DIM // NUM_HEADS


# --------------------------------------------------------------- fused kernel
def _fused_attn_kernel(x_ref, w_in_ref, b_in_ref, w_out_ref, b_out_ref, o_ref,
                       *, heads, head_dim):
    E = heads * head_dim
    x = x_ref[0]                                                   # (S, E) bf16

    # 1) fused QKV projection (single MXU matmul, f32 accumulate).
    qkv = jnp.dot(x, w_in_ref[...], preferred_element_type=jnp.float32)
    qkv = (qkv + b_in_ref[...]).astype(jnp.bfloat16)               # (S, 3E)
    q = qkv[:, :E]
    k = qkv[:, E:2 * E]
    v = qkv[:, 2 * E:]

    # 2) attention core, heads unrolled with static lane slices (VMEM/vreg only,
    #    no HBM traffic, no XLA transposes).  1/sqrt(Dh) is pre-folded into the
    #    Q weight columns / bias.
    head_outs = []
    for h in range(heads):
        cols = slice(h * head_dim, (h + 1) * head_dim)
        qh, kh, vh = q[:, cols], k[:, cols], v[:, cols]
        # q @ k^T via dot_general (no explicit transpose materialized).
        s = lax.dot_general(qh, kh, (((1,), (1,)), ((), ())),
                            preferred_element_type=jnp.float32)    # (S, S) f32
        s = s - jnp.max(s, axis=-1, keepdims=True)
        p = jnp.exp(s)
        p = p * pl.reciprocal(jnp.sum(p, axis=-1, keepdims=True), approx=True)
        oh = jnp.dot(p.astype(jnp.bfloat16), vh,
                     preferred_element_type=jnp.float32)           # (S, Dh)
        head_outs.append(oh)
    attn = jnp.concatenate(head_outs, axis=-1).astype(jnp.bfloat16)  # (S, E)

    # 3) output projection; lane-dense (E=256) store.
    y = jnp.dot(attn, w_out_ref[...], preferred_element_type=jnp.float32)
    y = y + b_out_ref[...]
    o_ref[0] = y.astype(o_ref.dtype)


def _fused_forward(x_bf16, w_in_t, b_in_s, w_out_t, b_out_r, out_dtype):
    B, S, E = x_bf16.shape
    kernel = functools.partial(_fused_attn_kernel,
                               heads=NUM_HEADS, head_dim=HEAD_DIM)
    return pl.pallas_call(
        kernel,
        out_shape=jax.ShapeDtypeStruct((B, S, E), out_dtype),
        grid=(B,),
        in_specs=[
            pl.BlockSpec((1, S, E), lambda b: (b, 0, 0)),          # x (per batch)
            pl.BlockSpec((E, 3 * E), lambda b: (0, 0)),            # w_in^T (resident)
            pl.BlockSpec((1, 3 * E), lambda b: (0, 0)),            # b_in
            pl.BlockSpec((E, E), lambda b: (0, 0)),                # w_out^T (resident)
            pl.BlockSpec((1, E), lambda b: (0, 0)),                # b_out
        ],
        out_specs=pl.BlockSpec((1, S, E), lambda b: (b, 0, 0)),
        compiler_params=pltpu.CompilerParams(
            dimension_semantics=("parallel",)),
    )(x_bf16, w_in_t, b_in_s, w_out_t, b_out_r)


# ------------------------------------------------------- one-time weight prep
def prepare_mha_params(w_in, b_in, w_out, b_out):
    """Hoisted out of the per-call path: transpose to (K, N), fold 1/sqrt(Dh)
    into Q columns/bias, cast MXU operands to bf16.  Call ONCE at setup."""
    E = EMBED_DIM
    scale = 1.0 / (HEAD_DIM ** 0.5)
    col_scale = jnp.concatenate(
        [jnp.full((E,), scale, jnp.float32), jnp.ones((2 * E,), jnp.float32)])
    w_in_t = (w_in.astype(jnp.float32).T * col_scale[None, :]).astype(jnp.bfloat16)
    b_in_s = (b_in.astype(jnp.float32) * col_scale).reshape(1, 3 * E)
    w_out_t = w_out.astype(jnp.float32).T.astype(jnp.bfloat16)
    b_out_r = b_out.astype(jnp.float32).reshape(1, E)
    return w_in_t, b_in_s, w_out_t, b_out_r


@jax.jit
def self_attention_pallas(x, w_in_t, b_in_s, w_out_t, b_out_r):
    """x: (B, S, E) f32; weights already prepared by prepare_mha_params."""
    # TODO(synk): attn_mask / key_padding_mask / dropout are not implemented
    # (the module's forward never passes them).
    return _fused_forward(x.astype(jnp.bfloat16),
                          w_in_t, b_in_s, w_out_t, b_out_r, x.dtype)


# -------------------------------------------------------------- f32 reference
def self_attention_ref(x, w_in, b_in, w_out, b_out):
    """Pure-JAX f32 reference mirroring torch.nn.MultiheadAttention forward."""
    B, S, E = x.shape
    qkv = jnp.einsum('bse,fe->bsf', x, w_in) + b_in.reshape(1, 1, -1)
    q, k, v = qkv[..., :E], qkv[..., E:2 * E], qkv[..., 2 * E:]

    def split_heads(t):
        return t.reshape(B, S, NUM_HEADS, HEAD_DIM).transpose(0, 2, 1, 3)

    qh, kh, vh = split_heads(q), split_heads(k), split_heads(v)
    s = jnp.einsum('bhqd,bhkd->bhqk', qh, kh) / (HEAD_DIM ** 0.5)
    p = jax.nn.softmax(s, axis=-1)
    o = jnp.einsum('bhqk,bhkd->bhqd', p, vh)
    o = o.transpose(0, 2, 1, 3).reshape(B, S, E)
    return jnp.einsum('bse,fe->bsf', o, w_out) + b_out.reshape(1, 1, -1)


if __name__ == "__main__":
    B, S, E = 2, 8, EMBED_DIM

    key = jax.random.PRNGKey(0)
    kx, kwin, kbin, kwout, kbout = jax.random.split(key, 5)

    x = jax.random.normal(kx, (B, S, E), dtype=jnp.float32)
    # Deterministic synthetic parameters (shapes per nn.MultiheadAttention.__init__)
    w_in = jax.random.normal(kwin, (3 * E, E), dtype=jnp.float32) * 0.02
    b_in = jax.random.normal(kbin, (3 * E,), dtype=jnp.float32) * 0.02
    w_out = jax.random.normal(kwout, (E, E), dtype=jnp.float32) * 0.02
    b_out = jax.random.normal(kbout, (E,), dtype=jnp.float32) * 0.02

    # One-time weight preparation (outside the jitted per-call path).
    params = prepare_mha_params(w_in, b_in, w_out, b_out)
    params = jax.tree_util.tree_map(jax.block_until_ready, params)

    y = jax.block_until_ready(self_attention_pallas(x, *params))

    y_ref = self_attention_ref(x, w_in, b_in, w_out, b_out)
    assert y.shape == (B, S, E)
    # bf16 MXU operands + EUP approx reciprocal + scale folded into bf16 Q
    # weights -> compare at a bf16-appropriate tolerance.
    assert jnp.allclose(y, y_ref, rtol=2e-2, atol=2e-2), "mismatch vs reference"

    print("KERNEL_OK")
</pallas_src>

<mosaic_0001>
module attributes {stable_mosaic.version = 11 : i64} {
  func.func @_fused_attn_kernel(%arg0: i32, %arg1: memref<1x8x256xbf16, #tpu.memory_space<vmem>>, %arg2: memref<256x768xbf16, #tpu.memory_space<vmem>>, %arg3: memref<1x768xf32, #tpu.memory_space<vmem>>, %arg4: memref<256x256xbf16, #tpu.memory_space<vmem>>, %arg5: memref<1x256xf32, #tpu.memory_space<vmem>>, %arg6: memref<1x8x256xf32, #tpu.memory_space<vmem>>) attributes {dimension_semantics = [#tpu.dimension_semantics<parallel>], iteration_bounds = array<i64: 2>, scalar_prefetch = 0 : i64, scratch_operands = 0 : i64, tpu.core_type = #tpu.core_type<tc>, window_params = [{transform_indices = @transform_0, window_bounds = array<i64: 1, 8, 256>}, {pipeline_mode = #tpu.pipeline_mode<synchronous>, transform_indices = @transform_1, window_bounds = array<i64: 256, 768>}, {pipeline_mode = #tpu.pipeline_mode<synchronous>, transform_indices = @transform_2, window_bounds = array<i64: 1, 768>}, {pipeline_mode = #tpu.pipeline_mode<synchronous>, transform_indices = @transform_3, window_bounds = array<i64: 256, 256>}, {pipeline_mode = #tpu.pipeline_mode<synchronous>, transform_indices = @transform_4, window_bounds = array<i64: 1, 256>}, {transform_indices = @transform_5, window_bounds = array<i64: 1, 8, 256>}]} {
    %c0 = arith.constant 0 : index
    %c0_0 = arith.constant 0 : index
    %c0_1 = arith.constant 0 : index
    %0 = vector.load %arg1[%c0, %c0_0, %c0_1] : memref<1x8x256xbf16, #tpu.memory_space<vmem>>, vector<1x8x256xbf16>
    %1 = vector.shape_cast %0 : vector<1x8x256xbf16> to vector<8x256xbf16>
    %c0_2 = arith.constant 0 : index
    %c0_3 = arith.constant 0 : index
    %2 = vector.load %arg2[%c0_2, %c0_3] : memref<256x768xbf16, #tpu.memory_space<vmem>>, vector<256x768xbf16>
    %cst = arith.constant dense<0.000000e+00> : vector<8x768xf32>
    %3 = tpu.matmul %1, %2, %cst {dimension_numbers = #tpu.dot_dimension_numbers<[1], [0], [0], [1], [0, 0, 1, 1], [], []>} : vector<8x256xbf16>, vector<256x768xbf16>, vector<8x768xf32> -> vector<8x768xf32>
    %c0_4 = arith.constant 0 : index
    %c0_5 = arith.constant 0 : index
    %4 = vector.load %arg3[%c0_4, %c0_5] : memref<1x768xf32, #tpu.memory_space<vmem>>, vector<1x768xf32>
    %5 = vector.broadcast %4 : vector<1x768xf32> to vector<8x768xf32>
    %6 = arith.addf %3, %5 : vector<8x768xf32>
    %7 = arith.truncf %6 : vector<8x768xf32> to vector<8x768xbf16>
    %8 = vector.extract_strided_slice %7 {offsets = [0, 0], sizes = [8, 256], strides = [1, 1]} : vector<8x768xbf16> to vector<8x256xbf16>
    %9 = vector.extract_strided_slice %7 {offsets = [0, 256], sizes = [8, 256], strides = [1, 1]} : vector<8x768xbf16> to vector<8x256xbf16>
    %10 = vector.extract_strided_slice %7 {offsets = [0, 512], sizes = [8, 256], strides = [1, 1]} : vector<8x768xbf16> to vector<8x256xbf16>
    %11 = vector.extract_strided_slice %8 {offsets = [0, 0], sizes = [8, 32], strides = [1, 1]} : vector<8x256xbf16> to vector<8x32xbf16>
    %12 = vector.extract_strided_slice %9 {offsets = [0, 0], sizes = [8, 32], strides = [1, 1]} : vector<8x256xbf16> to vector<8x32xbf16>
    %13 = vector.extract_strided_slice %10 {offsets = [0, 0], sizes = [8, 32], strides = [1, 1]} : vector<8x256xbf16> to vector<8x32xbf16>
    %cst_6 = arith.constant dense<0.000000e+00> : vector<8x8xf32>
    %14 = tpu.matmul %11, %12, %cst_6 {dimension_numbers = #tpu.dot_dimension_numbers<[1], [1], [0], [0], [0, 0, 1, 0], [], []>} : vector<8x32xbf16>, vector<8x32xbf16>, vector<8x8xf32> -> vector<8x8xf32>
    %cst_7 = arith.constant dense<0xFF800000> : vector<8xf32>
    %15 = vector.multi_reduction <maximumf>, %14, %cst_7 [1] : vector<8x8xf32> to vector<8xf32>
    %16 = vector.shape_cast %15 : vector<8xf32> to vector<8x1xf32>
    %17 = vector.broadcast %16 : vector<8x1xf32> to vector<8x8xf32>
    %18 = arith.subf %14, %17 : vector<8x8xf32>
    %19 = math.exp %18 : vector<8x8xf32>
    %cst_8 = arith.constant dense<0.000000e+00> : vector<8xf32>
    %20 = vector.multi_reduction <add>, %19, %cst_8 [1] : vector<8x8xf32> to vector<8xf32>
    %21 = vector.shape_cast %20 : vector<8xf32> to vector<8x1xf32>
    %22 = tpu.reciprocal %21 {approx = true} : vector<8x1xf32> -> vector<8x1xf32>
    %23 = vector.broadcast %22 : vector<8x1xf32> to vector<8x8xf32>
    %24 = arith.mulf %19, %23 : vector<8x8xf32>
    %25 = arith.truncf %24 : vector<8x8xf32> to vector<8x8xbf16>
    %cst_9 = arith.constant dense<0.000000e+00> : vector<8x32xf32>
    %26 = tpu.matmul %25, %13, %cst_9 {dimension_numbers = #tpu.dot_dimension_numbers<[1], [0], [0], [1], [0, 0, 1, 1], [], []>} : vector<8x8xbf16>, vector<8x32xbf16>, vector<8x32xf32> -> vector<8x32xf32>
    %27 = vector.extract_strided_slice %8 {offsets = [0, 32], sizes = [8, 32], strides = [1, 1]} : vector<8x256xbf16> to vector<8x32xbf16>
    %28 = vector.extract_strided_slice %9 {offsets = [0, 32], sizes = [8, 32], strides = [1, 1]} : vector<8x256xbf16> to vector<8x32xbf16>
    %29 = vector.extract_strided_slice %10 {offsets = [0, 32], sizes = [8, 32], strides = [1, 1]} : vector<8x256xbf16> to vector<8x32xbf16>
    %cst_10 = arith.constant dense<0.000000e+00> : vector<8x8xf32>
    %30 = tpu.matmul %27, %28, %cst_10 {dimension_numbers = #tpu.dot_dimension_numbers<[1], [1], [0], [0], [0, 0, 1, 0], [], []>} : vector<8x32xbf16>, vector<8x32xbf16>, vector<8x8xf32> -> vector<8x8xf32>
    %cst_11 = arith.constant dense<0xFF800000> : vector<8xf32>
    %31 = vector.multi_reduction <maximumf>, %30, %cst_11 [1] : vector<8x8xf32> to vector<8xf32>
    %32 = vector.shape_cast %31 : vector<8xf32> to vector<8x1xf32>
    %33 = vector.broadcast %32 : vector<8x1xf32> to vector<8x8xf32>
    %34 = arith.subf %30, %33 : vector<8x8xf32>
    %35 = math.exp %34 : vector<8x8xf32>
    %cst_12 = arith.constant dense<0.000000e+00> : vector<8xf32>
    %36 = vector.multi_reduction <add>, %35, %cst_12 [1] : vector<8x8xf32> to vector<8xf32>
    %37 = vector.shape_cast %36 : vector<8xf32> to vector<8x1xf32>
    %38 = tpu.reciprocal %37 {approx = true} : vector<8x1xf32> -> vector<8x1xf32>
    %39 = vector.broadcast %38 : vector<8x1xf32> to vector<8x8xf32>
    %40 = arith.mulf %35, %39 : vector<8x8xf32>
    %41 = arith.truncf %40 : vector<8x8xf32> to vector<8x8xbf16>
    %cst_13 = arith.constant dense<0.000000e+00> : vector<8x32xf32>
    %42 = tpu.matmul %41, %29, %cst_13 {dimension_numbers = #tpu.dot_dimension_numbers<[1], [0], [0], [1], [0, 0, 1, 1], [], []>} : vector<8x8xbf16>, vector<8x32xbf16>, vector<8x32xf32> -> vector<8x32xf32>
    %43 = vector.extract_strided_slice %8 {offsets = [0, 64], sizes = [8, 32], strides = [1, 1]} : vector<8x256xbf16> to vector<8x32xbf16>
    %44 = vector.extract_strided_slice %9 {offsets = [0, 64], sizes = [8, 32], strides = [1, 1]} : vector<8x256xbf16> to vector<8x32xbf16>
    %45 = vector.extract_strided_slice %10 {offsets = [0, 64], sizes = [8, 32], strides = [1, 1]} : vector<8x256xbf16> to vector<8x32xbf16>
    %cst_14 = arith.constant dense<0.000000e+00> : vector<8x8xf32>
    %46 = tpu.matmul %43, %44, %cst_14 {dimension_numbers = #tpu.dot_dimension_numbers<[1], [1], [0], [0], [0, 0, 1, 0], [], []>} : vector<8x32xbf16>, vector<8x32xbf16>, vector<8x8xf32> -> vector<8x8xf32>
    %cst_15 = arith.constant dense<0xFF800000> : vector<8xf32>
    %47 = vector.multi_reduction <maximumf>, %46, %cst_15 [1] : vector<8x8xf32> to vector<8xf32>
    %48 = vector.shape_cast %47 : vector<8xf32> to vector<8x1xf32>
    %49 = vector.broadcast %48 : vector<8x1xf32> to vector<8x8xf32>
    %50 = arith.subf %46, %49 : vector<8x8xf32>
    %51 = math.exp %50 : vector<8x8xf32>
    %cst_16 = arith.constant dense<0.000000e+00> : vector<8xf32>
    %52 = vector.multi_reduction <add>, %51, %cst_16 [1] : vector<8x8xf32> to vector<8xf32>
    %53 = vector.shape_cast %52 : vector<8xf32> to vector<8x1xf32>
    %54 = tpu.reciprocal %53 {approx = true} : vector<8x1xf32> -> vector<8x1xf32>
    %55 = vector.broadcast %54 : vector<8x1xf32> to vector<8x8xf32>
    %56 = arith.mulf %51, %55 : vector<8x8xf32>
    %57 = arith.truncf %56 : vector<8x8xf32> to vector<8x8xbf16>
    %cst_17 = arith.constant dense<0.000000e+00> : vector<8x32xf32>
    %58 = tpu.matmul %57, %45, %cst_17 {dimension_numbers = #tpu.dot_dimension_numbers<[1], [0], [0], [1], [0, 0, 1, 1], [], []>} : vector<8x8xbf16>, vector<8x32xbf16>, vector<8x32xf32> -> vector<8x32xf32>
    %59 = vector.extract_strided_slice %8 {offsets = [0, 96], sizes = [8, 32], strides = [1, 1]} : vector<8x256xbf16> to vector<8x32xbf16>
    %60 = vector.extract_strided_slice %9 {offsets = [0, 96], sizes = [8, 32], strides = [1, 1]} : vector<8x256xbf16> to vector<8x32xbf16>
    %61 = vector.extract_strided_slice %10 {offsets = [0, 96], sizes = [8, 32], strides = [1, 1]} : vector<8x256xbf16> to vector<8x32xbf16>
    %cst_18 = arith.constant dense<0.000000e+00> : vector<8x8xf32>
    %62 = tpu.matmul %59, %60, %cst_18 {dimension_numbers = #tpu.dot_dimension_numbers<[1], [1], [0], [0], [0, 0, 1, 0], [], []>} : vector<8x32xbf16>, vector<8x32xbf16>, vector<8x8xf32> -> vector<8x8xf32>
    %cst_19 = arith.constant dense<0xFF800000> : vector<8xf32>
    %63 = vector.multi_reduction <maximumf>, %62, %cst_19 [1] : vector<8x8xf32> to vector<8xf32>
    %64 = vector.shape_cast %63 : vector<8xf32> to vector<8x1xf32>
    %65 = vector.broadcast %64 : vector<8x1xf32> to vector<8x8xf32>
    %66 = arith.subf %62, %65 : vector<8x8xf32>
    %67 = math.exp %66 : vector<8x8xf32>
    %cst_20 = arith.constant dense<0.000000e+00> : vector<8xf32>
    %68 = vector.multi_reduction <add>, %67, %cst_20 [1] : vector<8x8xf32> to vector<8xf32>
    %69 = vector.shape_cast %68 : vector<8xf32> to vector<8x1xf32>
    %70 = tpu.reciprocal %69 {approx = true} : vector<8x1xf32> -> vector<8x1xf32>
    %71 = vector.broadcast %70 : vector<8x1xf32> to vector<8x8xf32>
    %72 = arith.mulf %67, %71 : vector<8x8xf32>
    %73 = arith.truncf %72 : vector<8x8xf32> to vector<8x8xbf16>
    %cst_21 = arith.constant dense<0.000000e+00> : vector<8x32xf32>
    %74 = tpu.matmul %73, %61, %cst_21 {dimension_numbers = #tpu.dot_dimension_numbers<[1], [0], [0], [1], [0, 0, 1, 1], [], []>} : vector<8x8xbf16>, vector<8x32xbf16>, vector<8x32xf32> -> vector<8x32xf32>
    %75 = vector.extract_strided_slice %8 {offsets = [0, 128], sizes = [8, 32], strides = [1, 1]} : vector<8x256xbf16> to vector<8x32xbf16>
    %76 = vector.extract_strided_slice %9 {offsets = [0, 128], sizes = [8, 32], strides = [1, 1]} : vector<8x256xbf16> to vector<8x32xbf16>
    %77 = vector.extract_strided_slice %10 {offsets = [0, 128], sizes = [8, 32], strides = [1, 1]} : vector<8x256xbf16> to vector<8x32xbf16>
    %cst_22 = arith.constant dense<0.000000e+00> : vector<8x8xf32>
    %78 = tpu.matmul %75, %76, %cst_22 {dimension_numbers = #tpu.dot_dimension_numbers<[1], [1], [0], [0], [0, 0, 1, 0], [], []>} : vector<8x32xbf16>, vector<8x32xbf16>, vector<8x8xf32> -> vector<8x8xf32>
    %cst_23 = arith.constant dense<0xFF800000> : vector<8xf32>
    %79 = vector.multi_reduction <maximumf>, %78, %cst_23 [1] : vector<8x8xf32> to vector<8xf32>
    %80 = vector.shape_cast %79 : vector<8xf32> to vector<8x1xf32>
    %81 = vector.broadcast %80 : vector<8x1xf32> to vector<8x8xf32>
    %82 = arith.subf %78, %81 : vector<8x8xf32>
    %83 = math.exp %82 : vector<8x8xf32>
    %cst_24 = arith.constant dense<0.000000e+00> : vector<8xf32>
    %84 = vector.multi_reduction <add>, %83, %cst_24 [1] : vector<8x8xf32> to vector<8xf32>
    %85 = vector.shape_cast %84 : vector<8xf32> to vector<8x1xf32>
    %86 = tpu.reciprocal %85 {approx = true} : vector<8x1xf32> -> vector<8x1xf32>
    %87 = vector.broadcast %86 : vector<8x1xf32> to vector<8x8xf32>
    %88 = arith.mulf %83, %87 : vector<8x8xf32>
    %89 = arith.truncf %88 : vector<8x8xf32> to vector<8x8xbf16>
    %cst_25 = arith.constant dense<0.000000e+00> : vector<8x32xf32>
    %90 = tpu.matmul %89, %77, %cst_25 {dimension_numbers = #tpu.dot_dimension_numbers<[1], [0], [0], [1], [0, 0, 1, 1], [], []>} : vector<8x8xbf16>, vector<8x32xbf16>, vector<8x32xf32> -> vector<8x32xf32>
    %91 = vector.extract_strided_slice %8 {offsets = [0, 160], sizes = [8, 32], strides = [1, 1]} : vector<8x256xbf16> to vector<8x32xbf16>
    %92 = vector.extract_strided_slice %9 {offsets = [0, 160], sizes = [8, 32], strides = [1, 1]} : vector<8x256xbf16> to vector<8x32xbf16>
    %93 = vector.extract_strided_slice %10 {offsets = [0, 160], sizes = [8, 32], strides = [1, 1]} : vector<8x256xbf16> to vector<8x32xbf16>
    %cst_26 = arith.constant dense<0.000000e+00> : vector<8x8xf32>
    %94 = tpu.matmul %91, %92, %cst_26 {dimension_numbers = #tpu.dot_dimension_numbers<[1], [1], [0], [0], [0, 0, 1, 0], [], []>} : vector<8x32xbf16>, vector<8x32xbf16>, vector<8x8xf32> -> vector<8x8xf32>
    %cst_27 = arith.constant dense<0xFF800000> : vector<8xf32>
    %95 = vector.multi_reduction <maximumf>, %94, %cst_27 [1] : vector<8x8xf32> to vector<8xf32>
    %96 = vector.shape_cast %95 : vector<8xf32> to vector<8x1xf32>
    %97 = vector.broadcast %96 : vector<8x1xf32> to vector<8x8xf32>
    %98 = arith.subf %94, %97 : vector<8x8xf32>
    %99 = math.exp %98 : vector<8x8xf32>
    %cst_28 = arith.constant dense<0.000000e+00> : vector<8xf32>
    %100 = vector.multi_reduction <add>, %99, %cst_28 [1] : vector<8x8xf32> to vector<8xf32>
    %101 = vector.shape_cast %100 : vector<8xf32> to vector<8x1xf32>
    %102 = tpu.reciprocal %101 {approx = true} : vector<8x1xf32> -> vector<8x1xf32>
    %103 = vector.broadcast %102 : vector<8x1xf32> to vector<8x8xf32>
    %104 = arith.mulf %99, %103 : vector<8x8xf32>
    %105 = arith.truncf %104 : vector<8x8xf32> to vector<8x8xbf16>
    %cst_29 = arith.constant dense<0.000000e+00> : vector<8x32xf32>
    %106 = tpu.matmul %105, %93, %cst_29 {dimension_numbers = #tpu.dot_dimension_numbers<[1], [0], [0], [1], [0, 0, 1, 1], [], []>} : vector<8x8xbf16>, vector<8x32xbf16>, vector<8x32xf32> -> vector<8x32xf32>
    %107 = vector.extract_strided_slice %8 {offsets = [0, 192], sizes = [8, 32], strides = [1, 1]} : vector<8x256xbf16> to vector<8x32xbf16>
    %108 = vector.extract_strided_slice %9 {offsets = [0, 192], sizes = [8, 32], strides = [1, 1]} : vector<8x256xbf16> to vector<8x32xbf16>
    %109 = vector.extract_strided_slice %10 {offsets = [0, 192], sizes = [8, 32], strides = [1, 1]} : vector<8x256xbf16> to vector<8x32xbf16>
    %cst_30 = arith.constant dense<0.000000e+00> : vector<8x8xf32>
    %110 = tpu.matmul %107, %108, %cst_30 {dimension_numbers = #tpu.dot_dimension_numbers<[1], [1], [0], [0], [0, 0, 1, 0], [], []>} : vector<8x32xbf16>, vector<8x32xbf16>, vector<8x8xf32> -> vector<8x8xf32>
    %cst_31 = arith.constant dense<0xFF800000> : vector<8xf32>
    %111 = vector.multi_reduction <maximumf>, %110, %cst_31 [1] : vector<8x8xf32> to vector<8xf32>
    %112 = vector.shape_cast %111 : vector<8xf32> to vector<8x1xf32>
    %113 = vector.broadcast %112 : vector<8x1xf32> to vector<8x8xf32>
    %114 = arith.subf %110, %113 : vector<8x8xf32>
    %115 = math.exp %114 : vector<8x8xf32>
    %cst_32 = arith.constant dense<0.000000e+00> : vector<8xf32>
    %116 = vector.multi_reduction <add>, %115, %cst_32 [1] : vector<8x8xf32> to vector<8xf32>
    %117 = vector.shape_cast %116 : vector<8xf32> to vector<8x1xf32>
    %118 = tpu.reciprocal %117 {approx = true} : vector<8x1xf32> -> vector<8x1xf32>
    %119 = vector.broadcast %118 : vector<8x1xf32> to vector<8x8xf32>
    %120 = arith.mulf %115, %119 : vector<8x8xf32>
    %121 = arith.truncf %120 : vector<8x8xf32> to vector<8x8xbf16>
    %cst_33 = arith.constant dense<0.000000e+00> : vector<8x32xf32>
    %122 = tpu.matmul %121, %109, %cst_33 {dimension_numbers = #tpu.dot_dimension_numbers<[1], [0], [0], [1], [0, 0, 1, 1], [], []>} : vector<8x8xbf16>, vector<8x32xbf16>, vector<8x32xf32> -> vector<8x32xf32>
    %123 = vector.extract_strided_slice %8 {offsets = [0, 224], sizes = [8, 32], strides = [1, 1]} : vector<8x256xbf16> to vector<8x32xbf16>
    %124 = vector.extract_strided_slice %9 {offsets = [0, 224], sizes = [8, 32], strides = [1, 1]} : vector<8x256xbf16> to vector<8x32xbf16>
    %125 = vector.extract_strided_slice %10 {offsets = [0, 224], sizes = [8, 32], strides = [1, 1]} : vector<8x256xbf16> to vector<8x32xbf16>
    %cst_34 = arith.constant dense<0.000000e+00> : vector<8x8xf32>
    %126 = tpu.matmul %123, %124, %cst_34 {dimension_numbers = #tpu.dot_dimension_numbers<[1], [1], [0], [0], [0, 0, 1, 0], [], []>} : vector<8x32xbf16>, vector<8x32xbf16>, vector<8x8xf32> -> vector<8x8xf32>
    %cst_35 = arith.constant dense<0xFF800000> : vector<8xf32>
    %127 = vector.multi_reduction <maximumf>, %126, %cst_35 [1] : vector<8x8xf32> to vector<8xf32>
    %128 = vector.shape_cast %127 : vector<8xf32> to vector<8x1xf32>
    %129 = vector.broadcast %128 : vector<8x1xf32> to vector<8x8xf32>
    %130 = arith.subf %126, %129 : vector<8x8xf32>
    %131 = math.exp %130 : vector<8x8xf32>
    %cst_36 = arith.constant dense<0.000000e+00> : vector<8xf32>
    %132 = vector.multi_reduction <add>, %131, %cst_36 [1] : vector<8x8xf32> to vector<8xf32>
    %133 = vector.shape_cast %132 : vector<8xf32> to vector<8x1xf32>
    %134 = tpu.reciprocal %133 {approx = true} : vector<8x1xf32> -> vector<8x1xf32>
    %135 = vector.broadcast %134 : vector<8x1xf32> to vector<8x8xf32>
    %136 = arith.mulf %131, %135 : vector<8x8xf32>
    %137 = arith.truncf %136 : vector<8x8xf32> to vector<8x8xbf16>
    %cst_37 = arith.constant dense<0.000000e+00> : vector<8x32xf32>
    %138 = tpu.matmul %137, %125, %cst_37 {dimension_numbers = #tpu.dot_dimension_numbers<[1], [0], [0], [1], [0, 0, 1, 1], [], []>} : vector<8x8xbf16>, vector<8x32xbf16>, vector<8x32xf32> -> vector<8x32xf32>
    %139 = tpu.concatenate %26, %42, %58, %74, %90, %106, %122, %138 in 1 : vector<8x32xf32>, vector<8x32xf32>, vector<8x32xf32>, vector<8x32xf32>, vector<8x32xf32>, vector<8x32xf32>, vector<8x32xf32>, vector<8x32xf32> -> vector<8x256xf32>
    %140 = arith.truncf %139 : vector<8x256xf32> to vector<8x256xbf16>
    %c0_38 = arith.constant 0 : index
    %c0_39 = arith.constant 0 : index
    %141 = vector.load %arg4[%c0_38, %c0_39] : memref<256x256xbf16, #tpu.memory_space<vmem>>, vector<256x256xbf16>
    %cst_40 = arith.constant dense<0.000000e+00> : vector<8x256xf32>
    %142 = tpu.matmul %140, %141, %cst_40 {dimension_numbers = #tpu.dot_dimension_numbers<[1], [0], [0], [1], [0, 0, 1, 1], [], []>} : vector<8x256xbf16>, vector<256x256xbf16>, vector<8x256xf32> -> vector<8x256xf32>
    %c0_41 = arith.constant 0 : index
    %c0_42 = arith.constant 0 : index
    %143 = vector.load %arg5[%c0_41, %c0_42] : memref<1x256xf32, #tpu.memory_space<vmem>>, vector<1x256xf32>
    %144 = vector.broadcast %143 : vector<1x256xf32> to vector<8x256xf32>
    %145 = arith.addf %142, %144 : vector<8x256xf32>
    %c0_43 = arith.constant 0 : index
    %c0_44 = arith.constant 0 : index
    %c0_45 = arith.constant 0 : index
    %146 = vector.load %arg6[%c0_43, %c0_44, %c0_45] : memref<1x8x256xf32, #tpu.memory_space<vmem>>, vector<1x8x256xf32>
    %147 = vector.shape_cast %146 : vector<1x8x256xf32> to vector<8x256xf32>
    %148 = vector.shape_cast %145 : vector<8x256xf32> to vector<1x8x256xf32>
    tpu.vector_store %arg6[%c0_43, %c0_44, %c0_45], %148 {strides = array<i32>} : memref<1x8x256xf32, #tpu.memory_space<vmem>>, vector<1x8x256xf32>,
    return
  }
  func.func @transform_0(%arg0: i32) -> (i32, i32, i32) {
    %c0_i32 = arith.constant 0 : i32
    %c0_i32_0 = arith.constant 0 : i32
    %c0_i32_1 = arith.constant 0 : i32
    return %arg0, %c0_i32, %c0_i32_0 : i32, i32, i32
  }
  func.func @transform_1(%arg0: i32) -> (i32, i32) {
    %c0_i32 = arith.constant 0 : i32
    %c0_i32_0 = arith.constant 0 : i32
    %c0_i32_1 = arith.constant 0 : i32
    return %c0_i32, %c0_i32_0 : i32, i32
  }
  func.func @transform_2(%arg0: i32) -> (i32, i32) {
    %c0_i32 = arith.constant 0 : i32
    %c0_i32_0 = arith.constant 0 : i32
    %c0_i32_1 = arith.constant 0 : i32
    return %c0_i32, %c0_i32_0 : i32, i32
  }
  func.func @transform_3(%arg0: i32) -> (i32, i32) {
    %c0_i32 = arith.constant 0 : i32
    %c0_i32_0 = arith.constant 0 : i32
    %c0_i32_1 = arith.constant 0 : i32
    return %c0_i32, %c0_i32_0 : i32, i32
  }
  func.func @transform_4(%arg0: i32) -> (i32, i32) {
    %c0_i32 = arith.constant 0 : i32
    %c0_i32_0 = arith.constant 0 : i32
    %c0_i32_1 = arith.constant 0 : i32
    return %c0_i32, %c0_i32_0 : i32, i32
  }
  func.func @transform_5(%arg0: i32) -> (i32, i32, i32) {
    %c0_i32 = arith.constant 0 : i32
    %c0_i32_0 = arith.constant 0 : i32
    %c0_i32_1 = arith.constant 0 : i32
    return %arg0, %c0_i32, %c0_i32_0 : i32, i32, i32
  }
}

</mosaic_0001>

<bundles_post_ra>
// kernel: self_attention_pallas.1
= control target key start
LH: loop header
LB: loop body
LE: loop exit
PB: predicated region body
PF: predicated region fallthrough
CT: control target
= control target key end

     0   :  { %10 = vsyncpa [#allocation3], 0  ;;  %s3411_s0 = inlined_call_operand.vmem [shape: bf16[2,8,256], index: 0, kind: input, shape index: {}]   ;;  %s3412_s1 = inlined_call_operand.hbm [shape: bf16[256,768], index: 1, kind: input, shape index: {}]   ;;  %s3413_s2 = inlined_call_operand.vmem [shape: f32[1,768], index: 2, kind: input, shape index: {}]   ;;  %s3414_s3 = inlined_call_operand.hbm [shape: bf16[256,256], index: 3, kind: input, shape index: {}]   ;;  %s3415_s4 = inlined_call_operand.vmem [shape: f32[1,256], index: 4, kind: input, shape index: {}]   ;;  %s3416_s5 = inlined_call_operand.hbm [shape: f32[2,8,256], index: 5, kind: output, shape index: {}]  }
   0x1   :  { %11 = vsyncpa [#allocation6], 0 }
   0x2   :  { %12 = vsyncpa [#allocation4], 0 }
   0x3   :  { %14 = vsyncpa [#allocation4 + $0x1], 0  ;;  %s3025_s18 = smov 0   ;;  %s3027_s19 = smov 0  }
   0x4   :  { %s3029_s20 = smov 0   ;;  %s3031_s21 = smov 0  }
   0x5 LB: > { %s3046_s22 = sadd.s32 4294967295, %s2981_s21   ;;  %s2253_s23 = sadd.s32 4294967294, %s2981_s21   ;;  %s2981_s21 = sphi %s3031_s21, %s3434_s21   ;;  %s2977_s20 = sphi %s3029_s20, %s3433_s20   ;;  %s2973_s19 = sphi %s3027_s19, %s3432_s19   ;;  %s2969_s18 = sphi %s3025_s18, %s3431_s18  }
   0x6   : > { %s3050_s24 = sadd.s32 1, %s2981_s21   ;;  %s137_s25 = sadd.s32 1, %s2977_s20 }
   0x7   : > { %s134_s26 = ssub.s32 %s2981_s21, %s3050_s24  ;;  %p147_p0 = scmp.ne.s32.totalorder %s2977_s20, %s2973_s19 }
   0x8   : > { %p135_p1 = scmp.eq.s32.totalorder %s134_s26, 0  ;;  %p148_p2 = scmp.eq.s32.totalorder %s3046_s22, 1 }
   0x9   : > { %p153_p3 = scmp.ne.s32.totalorder %s2973_s19, %s2969_s18  ;;  %p154_p4 = scmp.eq.s32.totalorder %s2253_s23, 1 }
   0xa   : > { %s3061_s27 = scalar_select %p135_p1, %s2977_s20, %s137_s25  }
   0xb   : > { %p3063_p5 = por %p148_p2, %p147_p0  ;;  %p3067_p6 = por %p154_p4, %p153_p3 }
   0xc   : > { %p2254_p7 = scmp.ge.s32.totalorder %s2981_s21, 1  ;;  %p161_p8 = scmp.lt.s32.totalorder %s2981_s21, 3 }
   0xd   : > { %s3420_s28 = scalar_select %p3063_p5, 1, 0 }
   0xe   : > { %s3421_s29 = scalar_select %p3067_p6, 1, 0 }
   0xf   : > { %p3417_p9 = scmp.eq.s32.totalorder %s3046_s22, 0  ;;  %p3074_p10 = pnand %p2254_p7, %p161_p8 }
  0x10   : > { %s2983_s6 = smov [#allocation2]   ;;  %s2984_s9 = smov [#allocation5]  }
  0x11   : > { %s3422_s30 = scalar_select %p3074_p10, 1, 0 }
  0x12   : > { %s173_s7 = sshll.u32 %s2983_s6, 4  ;;  %p2555_p11 = pneg %p3074_p10  ;;  %s174_s7 = int_to_ptr.vmem [resolvable:$true] %s173_s7 }
  0x13   : > { %s189_s10 = sshll.u32 %s2984_s9, 4  ;;  %s2855_s13 = scalar_lea.hbm %s3412_s1, 12288  ;;  %s3086_s10 = int_to_ptr.vmem [resolvable:$true] %s189_s10 }
  0x14   : > { %p3082_p12 = pnand %p3417_p9, %p2555_p11  ;;  %p2856_p13 = scmp.ne.s32.totalorder %s3412_s1, %s2855_s13 }
  0x15   : > { %p2862_p3 = scmp.lt.u32.totalorder %s2855_s13, %s3412_s1 }
  0x16   : > { %p2857_p0 = pneg %p3082_p12 }
  0x18   : > { %p2858_p1 = pnand %p2857_p0, %p2856_p13 }
  0x1a   : > { %p2859_p2 = pneg %p2858_p1 }
  0x1c   : > { %p2864_p4 = pnand %p2862_p3, %p2859_p2 }
  0x1e   : > { %2867 = shalt.err (!%p2864_p4)
}
  0x1f   : > { %s2868_s23 = scalar_lea.vmem %s174_s7, 12288  ;;  %p2876_p9 = scmp.lt.s32.totalorder %s174_s7, %s174_s7 }
  0x20   : > { %p2869_p7 = scmp.ne.s32.totalorder %s174_s7, %s2868_s23  ;;  %p2877_p6 = scmp.lt.s32.totalorder %s2868_s23, %s2868_s23 }
  0x22   : > { %p2871_p8 = pnand %p2869_p7, %p2857_p0  ;;  %p2878_p5 = por %p2877_p6, %p2876_p9 }
  0x24   : > { %p2872_p11 = pneg %p2871_p8 }
  0x26   : > { %p2879_p10 = pnand %p2878_p5, %p2872_p11 }
  0x28   : > { %2882 = shalt.err (!%p2879_p10)
}
  0x29   : > { %s2985_s25 = smov 384   ;;  %s2986_s26 = smov 24  }
  0x2a   : > { %2558 = dma.hbm_to_vmem [thread:$0]  (!%p3082_p12), %s3412_s1, 12288, %s174_s7, [#allocation3], %s2985_s25, %s2985_s25, %s2986_s26  }
  0x2b   : > { %s2883_s13 = scalar_lea.hbm %s3414_s3, 4096 }
  0x2c   : > { %p2884_p13 = scmp.ne.s32.totalorder %s3414_s3, %s2883_s13  ;;  %p2890_p9 = scmp.lt.u32.totalorder %s2883_s13, %s3414_s3 }
  0x2e   : > { %p2886_p5 = pnand %p2884_p13, %p2857_p0 }
  0x30   : > { %p2887_p6 = pneg %p2886_p5 }
  0x32   : > { %p2892_p10 = pnand %p2890_p9, %p2887_p6 }
  0x34   : > { %2895 = shalt.err (!%p2892_p10)
}
  0x35   : > { %s2896_s7 = scalar_lea.vmem %s3086_s10, 4096  ;;  %p2904_p4 = scmp.lt.s32.totalorder %s3086_s10, %s3086_s10 }
  0x36   : > { %p2897_p1 = scmp.ne.s32.totalorder %s3086_s10, %s2896_s7  ;;  %p2905_p7 = scmp.lt.s32.totalorder %s2896_s7, %s2896_s7 }
  0x38   : > { %p2899_p2 = pnand %p2897_p1, %p2857_p0  ;;  %p2906_p8 = por %p2905_p7, %p2904_p4 }
  0x3a   : > { %p2900_p3 = pneg %p2899_p2 }
  0x3c   : > { %p2907_p11 = pnand %p2906_p8, %p2900_p3 }
  0x3e   : > { %2910 = shalt.err (!%p2907_p11)
}
  0x3f   : > { %s2987_s23 = smov 128   ;;  %s2988_s25 = smov 8  }
  0x40   : > { %2561 = dma.hbm_to_vmem [thread:$0]  (!%p3082_p12), %s3414_s3, 4096, %s3086_s10, [#allocation6], %s2987_s23, %s2987_s23, %s2988_s25  }
  0x41   : > { %p3424_p13 = scmp.ne.s32.totalorder %s3422_s30, 0 }
  0x42   : > { %p3425_p0 = scmp.eq.s32.totalorder (!%p3424_p13), %s3046_s22, 0 }
  0x43   : > { %216 = sbr.rel (%p3424_p13) target bundleno = 5211 (0x145b), region = 40 }
  0x4a   : > { %2956 = dma.done.wait (%p3425_p0), [#allocation3], 12288   ;;  %p3426_p5 = pmov %p3425_p0 }
  0x4b   : > { %p3427_p6 = pmov %p3425_p0 }
  0x4c   : > { %2958 = vsyncadd (%p3426_p5), [#allocation3], 4294955008 }
  0x4d   : > { %2960 = dma.done.wait (%p3427_p6), [#allocation6], 4096   ;;  %p3428_p9 = pmov %p3425_p0 }
  0x4e   : > { %v2629_v0 = vld [vmem:[#allocation2 + $0xc] ss:$24 sps:$4 sm:$0xff]   ;;  %v2631_v1 = vld [vmem:[#allocation2 + $0x8] ss:$24 sps:$4 sm:$0xff]   ;;  %v2632_v2 = vld [vmem:[#allocation2 + $0x3c] ss:$24 sps:$4 sm:$0xff]  }
  0x4f   : > { %2962 = vsyncadd (%p3428_p9), [#allocation6], 4294963200  ;;  %911 = vmatprep.subr.bf16.mxu1 %v2629_v0  ;;  %v2634_v3 = vld [vmem:[#allocation2 + $0x38] ss:$24 sps:$4 sm:$0xff]   ;;  %v2635_v4 = vld [vmem:[#allocation2 + $0x4] ss:$24 sps:$4 sm:$0xff]  }
  0x50   : > { %912 = vmatpush1.bf16.msra.mxu1 %v2631_v1  ;;  %v2637_v5 = vld [vmem:[#allocation2] ss:$24 sps:$4 sm:$0xff]   ;;  %v2638_v6 = vld [vmem:[#allocation2 + $0x6c] ss:$24 sps:$4 sm:$0xff]   ;;  %870 = vmatprep.subr.bf16.mxu0 %v2635_v4  ;;  %v2643_v8 = vld [vmem:[#allocation2 + $0x30] ss:$24 sps:$4 sm:$0xff]   ;;  %v353_v4 = vlaneseq }
  0x51   : > { %913 = vmatprep.subr.bf16.mxu1 %v2632_v2  ;;  %871 = vmatpush1.bf16.msra.mxu0 %v2637_v5  ;;  %v2641_v7 = vld [vmem:[#allocation2 + $0x34] ss:$24 sps:$4 sm:$0xff]   ;;  %v2640_v9 = vld [vmem:[#allocation2 + $0x68] ss:$24 sps:$4 sm:$0xff]   ;;  %v2647_v11 = vld [vmem:[#allocation2 + $0x64] ss:$24 sps:$4 sm:$0xff]  }
  0x52   : > { %v2644_v10 = vld [vmem:[#allocation2 + $0x9c] ss:$24 sps:$4 sm:$0xff]   ;;  %872 = vmatprep.subr.bf16.mxu0 %v2641_v7  ;;  %v2649_v12 = vld [vmem:[#allocation2 + $0x60] ss:$24 sps:$4 sm:$0xff]   ;;  %v2650_v15 = vld [vmem:[#allocation2 + $0xcc] ss:$24 sps:$4 sm:$0xff]  }
  0x53   : > { %v2646_v13 = vld [vmem:[#allocation2 + $0x98] ss:$24 sps:$4 sm:$0xff]   ;;  %v2653_v14 = vld [vmem:[#allocation2 + $0x94] ss:$24 sps:$4 sm:$0xff]   ;;  %v2652_v17 = vld [vmem:[#allocation2 + $0xc8] ss:$24 sps:$4 sm:$0xff]  }
  0x54   : > { %914 = vmatpush1.bf16.msra.mxu1 %v2634_v3  ;;  %v2655_v16 = vld [vmem:[#allocation2 + $0x90] ss:$24 sps:$4 sm:$0xff]   ;;  %v2659_v18 = vld [vmem:[#allocation2 + $0xc4] ss:$24 sps:$4 sm:$0xff]   ;;  %v2661_v20 = vld [vmem:[#allocation2 + $0xc0] ss:$24 sps:$4 sm:$0xff]  }
  0x55   : > { %915 = vmatprep.subr.bf16.mxu1 %v2638_v6  ;;  %873 = vmatpush1.bf16.msra.mxu0 %v2643_v8  ;;  %v2656_v19 = vld [vmem:[#allocation2 + $0xfc] ss:$24 sps:$4 sm:$0xff]   ;;  %v2658_v21 = vld [vmem:[#allocation2 + $0xf8] ss:$24 sps:$4 sm:$0xff]   ;;  %v2662_v23 = vld [vmem:[#allocation2 + $0x12c] ss:$24 sps:$4 sm:$0xff]  }
  0x56   : > { %874 = vmatprep.subr.bf16.mxu0 %v2647_v11  ;;  %v2665_v22 = vld [vmem:[#allocation2 + $0xf4] ss:$24 sps:$4 sm:$0xff]   ;;  %v2667_v24 = vld [vmem:[#allocation2 + $0xf0] ss:$24 sps:$4 sm:$0xff]   ;;  %v2671_v26 = vld [vmem:[#allocation2 + $0x124] ss:$24 sps:$4 sm:$0xff]  }
  0x57   : > { %v2664_v25 = vld [vmem:[#allocation2 + $0x128] ss:$24 sps:$4 sm:$0xff]   ;;  %v2668_v27 = vld [vmem:[#allocation2 + $0x15c] ss:$24 sps:$4 sm:$0xff]   ;;  %v2670_v29 = vld [vmem:[#allocation2 + $0x158] ss:$24 sps:$4 sm:$0xff]  }
  0x58   : > { %916 = vmatpush1.bf16.msra.mxu1 %v2640_v9  ;;  %v2673_v28 = vld [vmem:[#allocation2 + $0x120] ss:$24 sps:$4 sm:$0xff]   ;;  %v2677_v30 = vld [vmem:[#allocation2 + $0x154] ss:$24 sps:$4 sm:$0xff]   ;;  %p248_p12 = scmp.lt.s32.totalorder %s3046_s22, 1  ;;  %v2989_v3 = vmov 0.0  }
  0x59   : > { %917 = vmatprep.subr.bf16.mxu1 %v2644_v10  ;;  %875 = vmatpush1.bf16.msra.mxu0 %v2649_v12  ;;  %v2674_v31 = vld [vmem:[#allocation2 + $0x18c] ss:$24 sps:$4 sm:$0xff]   ;;  %v2679_v32 = vld [vmem:[#allocation2 + $0x150] ss:$24 sps:$4 sm:$0xff]   ;;  %v2680_v35 = vld [vmem:[#allocation2 + $0x1bc] ss:$24 sps:$4 sm:$0xff]  }
  0x5a   : > { %876 = vmatprep.subr.bf16.mxu0 %v2653_v14  ;;  %v2676_v33 = vld [vmem:[#allocation2 + $0x188] ss:$24 sps:$4 sm:$0xff]   ;;  %v2683_v34 = vld [vmem:[#allocation2 + $0x184] ss:$24 sps:$4 sm:$0xff]   ;;  %s249_s30 = scalar_select %p248_p12, %s3046_s22, 1  ;;  %vm2990_vm0 = vmmov 0  }
  0x5b   : > { %v2685_v36 = vld [vmem:[#allocation2 + $0x180] ss:$24 sps:$4 sm:$0xff]   ;;  %v2689_v38 = vld [vmem:[#allocation2 + $0x1b4] ss:$24 sps:$4 sm:$0xff]   ;;  %v2691_v40 = vld [vmem:[#allocation2 + $0x1b0] ss:$24 sps:$4 sm:$0xff]  }
  0x5c   : > { %918 = vmatpush1.bf16.msra.mxu1 %v2646_v13  ;;  %v2682_v37 = vld [vmem:[#allocation2 + $0x1b8] ss:$24 sps:$4 sm:$0xff]   ;;  %s2415_s8 = sshll.u32 %s249_s30, 3  ;;  %v2686_v39 = vld [vmem:[#allocation2 + $0x1ec] ss:$24 sps:$4 sm:$0xff]   ;;  %v3157_v5 = vshrl.u32 %v353_v4, 7 }
  0x5d   : > { %919 = vmatprep.subr.bf16.mxu1 %v2650_v15  ;;  %877 = vmatpush1.bf16.msra.mxu0 %v2655_v16  ;;  %s252_s11 = scalar_lea.vmem %s3411_s0, %s2415_s8  ;;  %v2688_v41 = vld [vmem:[#allocation2 + $0x1e8] ss:$24 sps:$4 sm:$0xff]   ;;  %v2695_v42 = vld [vmem:[#allocation2 + $0x1e4] ss:$24 sps:$4 sm:$0xff]   ;;  %v2694_v44 = vld [vmem:[#allocation2 + $0x218] ss:$24 sps:$4 sm:$0xff]  }
  0x5e   : > { %878 = vmatprep.subr.bf16.mxu0 %v2659_v18  ;;  %v2692_v43 = vld [vmem:[#allocation2 + $0x21c] ss:$24 sps:$4 sm:$0xff]   ;;  %v254_v45 = vld [vmem:[%s252_s11] sm:$0xff]  ;;  %v2703_v50 = vld [vmem:[#allocation2 + $0x210] ss:$24 sps:$4 sm:$0xff]   ;;  %v363_v6 = vsub.s32 2, %v3157_v5 }
  0x5f   : > { %v2697_v46 = vld [vmem:[#allocation2 + $0x1e0] ss:$24 sps:$4 sm:$0xff]   ;;  %v2698_v47 = vld [vmem:[#allocation2 + $0x24c] ss:$24 sps:$4 sm:$0xff]   ;;  %v2265_v48 = vcombine.high %v254_v45, %v254_v45  ;;  %v2704_v53 = vld [vmem:[#allocation2 + $0x27c] ss:$24 sps:$4 sm:$0xff]   ;;  %v3150_v2 = vcombine.low %v254_v45, %v254_v45 }
  0x60   : > { %920 = vmatpush1.bf16.msra.mxu1 %v2652_v17  ;;  %v2701_v49 = vld [vmem:[#allocation2 + $0x214] ss:$24 sps:$4 sm:$0xff]   ;;  %v2700_v51 = vld [vmem:[#allocation2 + $0x248] ss:$24 sps:$4 sm:$0xff]   ;;  %v2707_v52 = vld [vmem:[#allocation2 + $0x244] ss:$24 sps:$4 sm:$0xff]  }
  0x61   : > { %921 = vmatprep.subr.bf16.mxu1 %v2656_v19  ;;  %879 = vmatpush1.bf16.msra.mxu0 %v2661_v20  ;;  %v2709_v54 = vld [vmem:[#allocation2 + $0x240] ss:$24 sps:$4 sm:$0xff]   ;;  %v2713_v56 = vld [vmem:[#allocation2 + $0x274] ss:$24 sps:$4 sm:$0xff]   ;;  %v2715_v58 = vld [vmem:[#allocation2 + $0x270] ss:$24 sps:$4 sm:$0xff]  }
  0x62   : > { %880 = vmatprep.subr.bf16.mxu0 %v2665_v22  ;;  %943 = vmatprep.mubr.bf16.mxu1 %v2265_v48  ;;  %v2706_v55 = vld [vmem:[#allocation2 + $0x278] ss:$24 sps:$4 sm:$0xff]   ;;  %v2710_v57 = vld [vmem:[#allocation2 + $0x2ac] ss:$24 sps:$4 sm:$0xff]   ;;  %v2712_v59 = vld [vmem:[#allocation2 + $0x2a8] ss:$24 sps:$4 sm:$0xff]  }
  0x63   : > { %902 = vmatprep.mubr.bf16.mxu0 %v2265_v48  ;;  %v2719_v60 = vld [vmem:[#allocation2 + $0x2a4] ss:$24 sps:$4 sm:$0xff]   ;;  %v2721_v62 = vld [vmem:[#allocation2 + $0x2a0] ss:$24 sps:$4 sm:$0xff]   ;;  %v2724_v0 = vld [vmem:[#allocation2 + $0x2d4] ss:$24 sps:$4 sm:$0xff]  }
  0x64   : > { %922 = vmatpush1.bf16.msra.mxu1 %v2658_v21  ;;  %v2716_v61 = vld [vmem:[#allocation2 + $0x2dc] ss:$24 sps:$4 sm:$0xff]   ;;  %v2718_v63 = vld [vmem:[#allocation2 + $0x2d8] ss:$24 sps:$4 sm:$0xff]   ;;  %v3163_v7 = vld [vmem:[%s3413_s2] sm:$0x3f] }
  0x65   : > { %923 = vmatprep.subr.bf16.mxu1 %v2662_v23  ;;  %881 = vmatpush1.bf16.msra.mxu0 %v2667_v24  ;;  %v2726_v1 = vld [vmem:[#allocation2 + $0x2d0] ss:$24 sps:$4 sm:$0xff]   ;;  %v355_v8 = vsub.s32 0, %v3157_v5  ;;  %v364_v9 = vrot.slane %v3163_v7, %v363_v6  ;;  %vm999_vm1 = vcmask 261120   ;;  %s2991_s14 = smov 96   ;;  %vm1046_vm2 = vcmask 64512  }
  0x66   : > { %882 = vmatprep.subr.bf16.mxu0 %v2671_v26  ;;  %v2727_v24 = vld [vmem:[#allocation2 + $0x10] ss:$24 sps:$4 sm:$0xff]   ;;  %v2732_v26 = vld [vmem:[#allocation2 + $0x44] ss:$24 sps:$4 sm:$0xff]   ;;  %vm1062_vm3 = vcmask 1043456   ;;  %s2992_s15 = smov 64  }
  0x67   : > { %v356_v11 = vrot.slane %v3163_v7, %v355_v8  ;;  %v2757_v45 = vld [vmem:[#allocation2 + $0x1f0] ss:$24 sps:$4 sm:$0xff]   ;;  %s2993_s16 = smov 32   ;;  %vm1901_vm4 = vcmask 523264   ;;  %vm1903_vm5 = vcmask 785408   ;;  %s245_s17 = sand.u32 1, %s2973_s19  }
  0x68   : > { %924 = vmatpush1.bf16.msra.mxu1 %v2664_v25  ;;  %v2729_v25 = vld [vmem:[#allocation2 + $0x14] ss:$24 sps:$4 sm:$0xff]   ;;  %s2261_s7 = sshll.u32 %s245_s17, 4  ;;  %s2416_s26 = sshll.u32 %s3046_s22, 8 }
  0x69   : > { %925 = vmatprep.subr.bf16.mxu1 %v2668_v27  ;;  %883 = vmatpush1.bf16.msra.mxu0 %v2673_v28  ;;  %v2730_v27 = vld [vmem:[#allocation2 + $0x40] ss:$24 sps:$4 sm:$0xff]   ;;  %v2735_v28 = vld [vmem:[#allocation2 + $0x74] ss:$24 sps:$4 sm:$0xff]   ;;  %s247_s6 = scalar_lea.vmem [#allocation7], %s2261_s7  ;;  %s3369_s9 = scalar_lea.hbm %s3416_s5, %s2416_s26 }
  0x6a   : > { %884 = vmatprep.subr.bf16.mxu0 %v2677_v30  ;;  %v2738_v30 = vld [vmem:[#allocation2 + $0xa4] ss:$24 sps:$4 sm:$0xff]   ;;  %s2172_s30 = sshll.u32 %s247_s6, 4  ;;  %s2158_s22 = scalar_lea.sflag [#allocation4], %s245_s17  ;;  %s3371_s30 = int_to_ptr.vmem [resolvable:$true] %s2172_s30 }
  0x6b   : > { %s2911_s11 = scalar_lea.vmem %s3371_s30, 256  ;;  %p3429_p1 = scmp.ne.s32.totalorder %s3420_s28, 0 }
  0x6c   : > { %926 = vmatpush1.bf16.msra.mxu1 %v2670_v29  ;;  %v2733_v29 = vld [vmem:[#allocation2 + $0x70] ss:$24 sps:$4 sm:$0xff]   ;;  %p2912_p10 = scmp.ne.s32.totalorder %s3371_s30, %s2911_s11  ;;  %s2994_s12 = smov [#allocation7]  }
  0x6d   : > { %927 = vmatprep.subr.bf16.mxu1 %v2674_v31  ;;  %885 = vmatpush1.bf16.msra.mxu0 %v2679_v32  ;;  %v2736_v31 = vld [vmem:[#allocation2 + $0xa0] ss:$24 sps:$4 sm:$0xff]   ;;  %v2741_v32 = vld [vmem:[#allocation2 + $0xd4] ss:$24 sps:$4 sm:$0xff]   ;;  %s2915_s13 = sshll.u32 %s2994_s12, 4  ;;  %s2916_s13 = int_to_ptr.vmem [resolvable:$false] %s2915_s13 }
  0x6e   : > { %886 = vmatprep.subr.bf16.mxu0 %v2683_v34  ;;  %v2744_v34 = vld [vmem:[#allocation2 + $0x104] ss:$24 sps:$4 sm:$0xff]   ;;  %p2913_p2 = pnand %p2912_p10, %p3429_p1  ;;  %p2918_p4 = scmp.lt.s32.totalorder %s3371_s30, %s2916_s13 }
  0x70   : > { %928 = vmatpush1.bf16.msra.mxu1 %v2676_v33  ;;  %v2739_v33 = vld [vmem:[#allocation2 + $0xd0] ss:$24 sps:$4 sm:$0xff]   ;;  %p2914_p3 = pneg %p2913_p2 }
  0x71   : > { %929 = vmatprep.subr.bf16.mxu1 %v2680_v35  ;;  %887 = vmatpush1.bf16.msra.mxu0 %v2685_v36  ;;  %v2742_v35 = vld [vmem:[#allocation2 + $0x100] ss:$24 sps:$4 sm:$0xff]   ;;  %v2747_v36 = vld [vmem:[#allocation2 + $0x134] ss:$24 sps:$4 sm:$0xff]  }
  0x72   : > { %888 = vmatprep.subr.bf16.mxu0 %v2689_v38  ;;  %v2750_v38 = vld [vmem:[#allocation2 + $0x164] ss:$24 sps:$4 sm:$0xff]  }
  0x74   : > { %930 = vmatpush1.bf16.msra.mxu1 %v2682_v37  ;;  %v2745_v37 = vld [vmem:[#allocation2 + $0x130] ss:$24 sps:$4 sm:$0xff]  }
  0x75   : > { %931 = vmatprep.subr.bf16.mxu1 %v2686_v39  ;;  %889 = vmatpush1.bf16.msra.mxu0 %v2691_v40  ;;  %v2748_v39 = vld [vmem:[#allocation2 + $0x160] ss:$24 sps:$4 sm:$0xff]   ;;  %v2753_v40 = vld [vmem:[#allocation2 + $0x194] ss:$24 sps:$4 sm:$0xff]  }
  0x76   : > { %890 = vmatprep.subr.bf16.mxu0 %v2695_v42  ;;  %v2756_v42 = vld [vmem:[#allocation2 + $0x1c4] ss:$24 sps:$4 sm:$0xff]  }
  0x78   : > { %932 = vmatpush1.bf16.msra.mxu1 %v2688_v41  ;;  %v2751_v41 = vld [vmem:[#allocation2 + $0x190] ss:$24 sps:$4 sm:$0xff]  }
  0x79   : > { %933 = vmatprep.subr.bf16.mxu1 %v2692_v43  ;;  %891 = vmatpush1.bf16.msra.mxu0 %v2697_v46  ;;  %v2754_v43 = vld [vmem:[#allocation2 + $0x1c0] ss:$24 sps:$4 sm:$0xff]   ;;  %v2762_v46 = vld [vmem:[#allocation2 + $0x224] ss:$24 sps:$4 sm:$0xff]  }
  0x7a   : > { %892 = vmatprep.subr.bf16.mxu0 %v2701_v49  ;;  %v2763_v49 = vld [vmem:[#allocation2 + $0x250] ss:$24 sps:$4 sm:$0xff]  }
  0x7c   : > { %934 = vmatpush1.bf16.msra.mxu1 %v2694_v44  ;;  %v2759_v44 = vld [vmem:[#allocation2 + $0x1f4] ss:$24 sps:$4 sm:$0xff]  }
  0x7d   : > { %935 = vmatprep.subr.bf16.mxu1 %v2698_v47  ;;  %893 = vmatpush1.bf16.msra.mxu0 %v2703_v50  ;;  %v2760_v47 = vld [vmem:[#allocation2 + $0x220] ss:$24 sps:$4 sm:$0xff]   ;;  %v2768_v50 = vld [vmem:[#allocation2 + $0x284] ss:$24 sps:$4 sm:$0xff]  }
  0x7e   : > { %894 = vmatprep.subr.bf16.mxu0 %v2707_v52  ;;  %v2771_v52 = vld [vmem:[#allocation2 + $0x2b4] ss:$24 sps:$4 sm:$0xff]  }
  0x80   : > { %936 = vmatpush1.bf16.msra.mxu1 %v2700_v51  ;;  %v2766_v51 = vld [vmem:[#allocation2 + $0x280] ss:$24 sps:$4 sm:$0xff]  }
  0x81   : > { %937 = vmatprep.subr.bf16.mxu1 %v2704_v53  ;;  %895 = vmatpush1.bf16.msra.mxu0 %v2709_v54  ;;  %v2769_v53 = vld [vmem:[#allocation2 + $0x2b0] ss:$24 sps:$4 sm:$0xff]   ;;  %v2774_v54 = vld [vmem:[#allocation2 + $0x2e4] ss:$24 sps:$4 sm:$0xff]  }
  0x82   : > { %896 = vmatprep.subr.bf16.mxu0 %v2713_v56 }
  0x84   : > { %938 = vmatpush1.bf16.msra.mxu1 %v2706_v55  ;;  %v2772_v55 = vld [vmem:[#allocation2 + $0x2e0] ss:$24 sps:$4 sm:$0xff]  }
  0x85   : > { %939 = vmatprep.subr.bf16.mxu1 %v2710_v57  ;;  %897 = vmatpush1.bf16.msra.mxu0 %v2715_v58 }
  0x86   : > { %898 = vmatprep.subr.bf16.mxu0 %v2719_v60 }
  0x88   : > { %940 = vmatpush1.bf16.msra.mxu1 %v2712_v59 }
  0x89   : > { %941 = vmatprep.subr.bf16.mxu1 %v2716_v61  ;;  %899 = vmatpush1.bf16.msra.mxu0 %v2721_v62 }
  0x8a   : > { %900 = vmatprep.subr.bf16.mxu0 %v2724_v0 }
  0x8c   : > { %942 = vmatpush1.bf16.msra.mxu1 %v2718_v63 }
  0x8d   : > { %901 = vmatpush1.bf16.msra.mxu0 %v2726_v1  ;;  %2449 = vmatprep.subr.bf16.mxu1 %v2989_v3 }
  0x8e   : > { %952 = vmatprep.subr.bf16.mxu0 %v2729_v25 }
  0x8f   : > { %944 = vmatmul.mubr.bf16.vlgmr.msra.gmra.mrb[0].mxu1 %v3150_v2 }
  0x90   : > { %903 = vmatmul.mubr.bf16.vlgmr.msra.gmra.mrb[0].mxu0 %v3150_v2  ;;  %2451 = vmatprep.mubr.msk.bf16.mxu1 %vm2990_vm0, %v2989_v3 }
  0x91   : > { %984 = vmatprep.mubr.bf16.mxu0 %v2265_v48  ;;  %953 = vmatpush1.bf16.msra.mxu0 %v2727_v24  ;;  %v2765_v48 = vld [vmem:[#allocation2 + $0x254] ss:$24 sps:$4 sm:$0xff]  }
  0x92   : > { %954 = vmatprep.subr.bf16.mxu0 %v2732_v26 }
  0x95   : > { %955 = vmatpush1.bf16.msra.mxu0 %v2730_v27 }
  0x96   : > { %956 = vmatprep.subr.bf16.mxu0 %v2735_v28 }
  0x99   : > { %957 = vmatpush1.bf16.msra.mxu0 %v2733_v29 }
  0x9a   : > { %958 = vmatprep.subr.bf16.mxu0 %v2738_v30 }
  0x9d   : > { %959 = vmatpush1.bf16.msra.mxu0 %v2736_v31 }
  0x9e   : > { %960 = vmatprep.subr.bf16.mxu0 %v2741_v32 }
  0xa1   : > { %961 = vmatpush1.bf16.msra.mxu0 %v2739_v33 }
  0xa2   : > { %962 = vmatprep.subr.bf16.mxu0 %v2744_v34 }
  0xa5   : > { %963 = vmatpush1.bf16.msra.mxu0 %v2742_v35 }
  0xa6   : > { %964 = vmatprep.subr.bf16.mxu0 %v2747_v36 }
  0xa9   : > { %965 = vmatpush1.bf16.msra.mxu0 %v2745_v37 }
  0xaa   : > { %966 = vmatprep.subr.bf16.mxu0 %v2750_v38 }
  0xad   : > { %967 = vmatpush1.bf16.msra.mxu0 %v2748_v39 }
  0xae   : > { %968 = vmatprep.subr.bf16.mxu0 %v2753_v40 }
  0xb1   : > { %969 = vmatpush1.bf16.msra.mxu0 %v2751_v41 }
  0xb2   : > { %970 = vmatprep.subr.bf16.mxu0 %v2756_v42 }
  0xb5   : > { %971 = vmatpush1.bf16.msra.mxu0 %v2754_v43 }
  0xb6   : > { %972 = vmatprep.subr.bf16.mxu0 %v2759_v44 }
  0xb9   : > { %973 = vmatpush1.bf16.msra.mxu0 %v2757_v45 }
  0xba   : > { %974 = vmatprep.subr.bf16.mxu0 %v2762_v46 }
  0xbd   : > { %975 = vmatpush1.bf16.msra.mxu0 %v2760_v47 }
  0xbe   : > { %976 = vmatprep.subr.bf16.mxu0 %v2765_v48 }
  0xc1   : > { %977 = vmatpush1.bf16.msra.mxu0 %v2763_v49 }
  0xc2   : > { %978 = vmatprep.subr.bf16.mxu0 %v2768_v50 }
  0xc5   : > { %979 = vmatpush1.bf16.msra.mxu0 %v2766_v51 }
  0xc6   : > { %980 = vmatprep.subr.bf16.mxu0 %v2771_v52 }
  0xc9   : > { %981 = vmatpush1.bf16.msra.mxu0 %v2769_v53 }
  0xca   : > { %982 = vmatprep.subr.bf16.mxu0 %v2774_v54 }
  0xcd   : > { %983 = vmatpush1.bf16.msra.mxu0 %v2772_v55 }
  0xd0   : > { %985 = vmatmul.mubr.bf16.vlgmr.msra.gmra.mrb[4].mxu0 %v3150_v2 }
 0x162   : > { %v945_v10 = vpop.f32.mrb[0].mxu1 }
 0x163   : > { %v946_v12 = vadd.f32 %v945_v10, %v364_v9  ;;  %v3170_v13 = vpop.f32.mrb[1].mxu1  ;;  %v904_v17 = vpop.f32.mrb[0].mxu0  ;;  %v371_v10 = vsub.s32 4, %v3157_v5 }
 0x164   : > { %v949_v14 = vpop.f32.mrb[2].mxu1  ;;  %v905_v18 = vadd.f32 %v904_v17, %v356_v11  ;;  %v3174_v19 = vpop.f32.mrb[1].mxu0 }
 0x165   : > { %v3172_v15 = vpack.c.bf16 %v946_v12, %v946_v12  ;;  %v950_v16 = vpop.f32.mrb[3].mxu1  ;;  %v908_v21 = vpop.f32.mrb[2].mxu0  ;;  %v372_v11 = vrot.slane %v3163_v7, %v371_v10 }
 0x166   : > { %v3180_v22 = vpack.c.bf16 %v905_v18, %v905_v18  ;;  %v909_v23 = vpop.f32.mrb[3].mxu0 }
 0x167   : > { %1110 = vrot.lane.b32.xlu1 %v3172_v15, %s2991_s14  ;;  %v1004_v20 = vsel %vm999_vm1, %v3172_v15, 0 }
 0x168   : > { %2450 = vmatpush3.bf16.xpose.msra.mxu1 %v1004_v20 }
 0x169   : > { %2455 = vmatprep.subr.bf16.mxu1 %v2989_v3 }
 0x16b   : > { %1107 = vrot.lane.b32.xlu1 %v3180_v22, %s2991_s14 }
 0x16f   : > { %2452 = vmatmul.mubr.msk.bf16.vlgmr.msra.gmra.mrb[4].mxu1 %vm999_vm1, %v3180_v22 }
 0x170   : > { %2457 = vmatprep.mubr.msk.bf16.mxu1 %vm2990_vm0, %v2989_v3 }
 0x1a3   : > { %v986_v0 = vpop.f32.mrb[4].mxu0 }
 0x1a4   : > { %v3191_v1 = vpop.f32.mrb[5].mxu0  ;;  %v987_v12 = vadd.f32 %v986_v0, %v372_v11 }
 0x1a5   : > { %v990_v4 = vpop.f32.mrb[6].mxu0 }
 0x1a6   : > { %v991_v6 = vpop.f32.mrb[7].mxu0  ;;  %v3196_v14 = vpack.c.bf16 %v987_v12, %v987_v12 }
 0x1a8   : > { %v1064_v16 = vsel %vm1062_vm3, %v3196_v14, 0 }
 0x1a9   : > { %2456 = vmatpush3.bf16.msra.mxu1 %v1064_v16 }
 0x1aa   : > { %2461 = vmatprep.subr.bf16.mxu1 %v2989_v3 }
 0x1d9   : > { %v1111_v21 = vpop.permute.xlu1 %1110 }
 0x1da   : > { %v1116_v24 = vsel %vm999_vm1, %v1111_v21, 0 }
 0x1dd   : > { %v1108_v25 = vpop.permute.xlu1 %1107 }
 0x242   : > { %v1040_v56 = vpop.f32.mrb[4].mxu1 }
 0x243   : > { %v2453_v57 = vpop.f32.mrb[5].mxu1  ;;  %v1047_v58 = vsel %vm1046_vm2, %v1040_v56, -inf }
 0x244   : > { %1048 = vmax.xlane.f32.xlu0 %v1047_v58  ;;  %v1043_v59 = vpop.f32.mrb[6].mxu1 }
 0x245   : > { %v2454_v60 = vpop.f32.mrb[7].mxu1 }
 0x2d1   : > { %v1049_v61 = vpop.xlane.xlu0 %1048 }
 0x2d2   : > { %v1050_v62 = vsub.f32 %v1040_v56, %v1049_v61 }
 0x2d4   : > { %v1051_v63 = vmul.f32 1.442695, %v1050_v62 }
 0x2d6   : > { %2823 = vpow2.f32 %v1051_v63 }
 0x2e0   : > { %v2824_v9 = vpop.eup %2823 }
 0x2e1   : > { %v1053_v2 = vsel %vm1046_vm2, %v2824_v9, 0.0 }
 0x2e2   : > { %1054 = vadd.xlane.f32.xlu0 %v1053_v2 }
 0x36f   : > { %v1055_v17 = vpop.xlane.xlu0 %1054 }
 0x370   : > { %2825 = vrcp.f32 %v1055_v17 }
 0x37a   : > { %v2826_v18 = vpop.eup %2825 }
 0x37b   : > { %v1057_v20 = vmul.f32 %v2826_v18, %v2824_v9 }
 0x37d   : > { %v1058_v23 = vpack.c.bf16 %v1057_v20, %v1057_v20 }
 0x37f   : > { %2458 = vmatmul.mubr.msk.bf16.vlgmr.msra.gmra.mrb[8].mxu1 %vm1046_vm2, %v1058_v23 }
 0x380   : > { %2462 = vmatpush3.bf16.xpose.msra.mxu1 %v1116_v24  ;;  %2463 = vmatprep.mubr.msk.bf16.mxu1 %vm2990_vm0, %v2989_v3 }
 0x381   : > { %2467 = vmatprep.subr.bf16.mxu1 %v2989_v3 }
 0x387   : > { %2464 = vmatmul.mubr.msk.bf16.vlgmr.msra.gmra.mrb[12].mxu1 %vm999_vm1, %v1108_v25 }
 0x388   : > { %2469 = vmatprep.mubr.msk.bf16.mxu1 %vm2990_vm0, %v2989_v3 }
 0x452   : > { %v3209_v26 = vpop.f32.mrb[8].mxu1 }
 0x453   : > { %v2459_v27 = vpop.f32.mrb[9].mxu1 }
 0x454   : > { %v1103_v28 = vpop.f32.mrb[10].mxu1 }
 0x455   : > { %v2460_v29 = vpop.f32.mrb[11].mxu1 }
 0x45a   : > { %v1152_v30 = vpop.f32.mrb[12].mxu1 }
 0x45b   : > { %v2465_v31 = vpop.f32.mrb[13].mxu1  ;;  %v1158_v32 = vsel %vm1046_vm2, %v1152_v30, -inf }
 0x45c   : > { %1159 = vmax.xlane.f32.xlu0 %v1158_v32  ;;  %v1155_v33 = vpop.f32.mrb[14].mxu1 }
 0x45d   : > { %v2466_v34 = vpop.f32.mrb[15].mxu1  ;;  %v367_v33 = vsub.s32 3, %v3157_v5 }
 0x472   : > { %1171 = vrot.lane.b32.xlu0 %v3196_v14, %s2991_s14 }
 0x476   : > { %1221 = vrot.lane.b32.xlu0 %v3172_v15, %s2992_s15 }
 0x47a   : > { %1219 = vrot.lane.b32.xlu0 %v3180_v22, %s2992_s15 }
 0x4e9   : > { %v1160_v35 = vpop.xlane.xlu0 %1159 }
 0x4ea   : > { %v1161_v36 = vsub.f32 %v1152_v30, %v1160_v35 }
 0x4ec   : > { %v1162_v37 = vmul.f32 1.442695, %v1161_v36  ;;  %v375_v36 = vsub.s32 5, %v3157_v5 }
 0x4ed   : > { %v1172_v38 = vpop.permute.xlu0 %1171 }
 0x4ee   : > { %2827 = vpow2.f32 %v1162_v37  ;;  %v1177_v39 = vsel %vm1062_vm3, %v1172_v38, 0  ;;  %v359_v37 = vsub.s32 1, %v3157_v5 }
 0x4ef   : > { %2468 = vmatpush3.bf16.msra.mxu1 %v1177_v39 }
 0x4f0   : > { %2473 = vmatprep.subr.bf16.mxu1 %v2989_v3 }
 0x4f1   : > { %v1222_v45 = vpop.permute.xlu0 %1221 }
 0x4f2   : > { %v1227_v47 = vsel %vm999_vm1, %v1222_v45, 0 }
 0x4f5   : > { %v1220_v49 = vpop.permute.xlu0 %1219 }
 0x4f8   : > { %v2828_v40 = vpop.eup %2827 }
 0x4f9   : > { %v1164_v41 = vsel %vm1046_vm2, %v2828_v40, 0.0 }
 0x4fa   : > { %1165 = vadd.xlane.f32.xlu1 %v1164_v41 }
 0x50b   : > { %1281 = vrot.lane.b32.xlu1 %v3196_v14, %s2992_s15 }
 0x587   : > { %v1166_v42 = vpop.xlane.xlu1 %1165 }
 0x588   : > { %2829 = vrcp.f32 %v1166_v42  ;;  %v360_v42 = vrot.slane %v3163_v7, %v359_v37 }
 0x58a   : > { %v907_v45 = vadd.f32 %v3174_v19, %v360_v42 }
 0x58b   : > { %v1282_v48 = vpop.permute.xlu1 %1281 }
 0x58c   : > { %v1287_v50 = vsel %vm1062_vm3, %v1282_v48, 0 }
 0x592   : > { %v2830_v43 = vpop.eup %2829 }
 0x593   : > { %v1168_v44 = vmul.f32 %v2830_v43, %v2828_v40  ;;  %v376_v40 = vrot.slane %v3163_v7, %v375_v36 }
 0x595   : > { %v1169_v46 = vpack.c.bf16 %v1168_v44, %v1168_v44  ;;  %v989_v44 = vadd.f32 %v3191_v1, %v376_v40 }
 0x597   : > { %2470 = vmatmul.mubr.msk.bf16.vlgmr.msra.gmra.mrb[16].mxu1 %vm1046_vm2, %v1169_v46  ;;  %v3276_v46 = vpack.c.bf16 %v989_v44, %v989_v44 }
 0x598   : > { %2474 = vmatpush3.bf16.xpose.msra.mxu1 %v1227_v47  ;;  %2475 = vmatprep.mubr.msk.bf16.mxu1 %vm2990_vm0, %v2989_v3  ;;  %v3278_v47 = vpack.c.bf16 %v907_v45, %v907_v45 }
 0x599   : > { %2479 = vmatprep.subr.bf16.mxu1 %v2989_v3 }
 0x59f   : > { %2476 = vmatmul.mubr.msk.bf16.vlgmr.msra.gmra.mrb[20].mxu1 %vm999_vm1, %v1220_v49 }
 0x5a0   : > { %2480 = vmatpush3.bf16.msra.mxu1 %v1287_v50  ;;  %2481 = vmatprep.mubr.msk.bf16.mxu1 %vm2990_vm0, %v2989_v3 }
 0x5a1   : > { %2485 = vmatprep.subr.bf16.mxu1 %v2989_v3 }
 0x66a   : > { %v3233_v51 = vpop.f32.mrb[16].mxu1 }
 0x66b   : > { %v2471_v52 = vpop.f32.mrb[17].mxu1 }
 0x66c   : > { %v1216_v53 = vpop.f32.mrb[18].mxu1 }
 0x66d   : > { %v2472_v54 = vpop.f32.mrb[19].mxu1 }
 0x672   : > { %v1263_v55 = vpop.f32.mrb[20].mxu1 }
 0x673   : > { %v2477_v56 = vpop.f32.mrb[21].mxu1  ;;  %v1269_v57 = vsel %vm1046_vm2, %v1263_v55, -inf }
 0x674   : > { %1270 = vmax.xlane.f32.xlu0 %v1269_v57  ;;  %v1266_v58 = vpop.f32.mrb[22].mxu1 }
 0x675   : > { %v2478_v59 = vpop.f32.mrb[23].mxu1 }
 0x701   : > { %v1271_v60 = vpop.xlane.xlu0 %1270 }
 0x702   : > { %v1272_v61 = vsub.f32 %v1263_v55, %v1271_v60 }
 0x704   : > { %v1273_v62 = vmul.f32 1.442695, %v1272_v61 }
 0x706   : > { %2831 = vpow2.f32 %v1273_v62 }
 0x710   : > { %v2832_v63 = vpop.eup %2831 }
 0x711   : > { %v1275_v0 = vsel %vm1046_vm2, %v2832_v63, 0.0 }
 0x712   : > { %1276 = vadd.xlane.f32.xlu1 %v1275_v0 }
 0x723   : > { %1331 = vrot.lane.b32.xlu1 %v3172_v15, %s2993_s16 }
 0x727   : > { %1329 = vrot.lane.b32.xlu1 %v3180_v22, %s2993_s16 }
 0x79f   : > { %v1277_v4 = vpop.xlane.xlu1 %1276 }
 0x7a0   : > { %2833 = vrcp.f32 %v1277_v4 }
 0x7a3   : > { %v1332_v2 = vpop.permute.xlu1 %1331 }
 0x7a4   : > { %v1337_v11 = vsel %vm999_vm1, %v1332_v2, 0 }
 0x7a7   : > { %v1330_v15 = vpop.permute.xlu1 %1329 }
 0x7aa   : > { %v2834_v6 = vpop.eup %2833 }
 0x7ab   : > { %v1279_v9 = vmul.f32 %v2834_v6, %v2832_v63 }
 0x7ad   : > { %v1280_v10 = vpack.c.bf16 %v1279_v9, %v1279_v9 }
 0x7af   : > { %2482 = vmatmul.mubr.msk.bf16.vlgmr.msra.gmra.mrb[24].mxu1 %vm1046_vm2, %v1280_v10 }
 0x7b0   : > { %2486 = vmatpush3.bf16.xpose.msra.mxu1 %v1337_v11  ;;  %2487 = vmatprep.mubr.msk.bf16.mxu1 %vm2990_vm0, %v2989_v3 }
 0x7b1   : > { %2491 = vmatprep.subr.bf16.mxu1 %v2989_v3 }
 0x7b7   : > { %2488 = vmatmul.mubr.msk.bf16.vlgmr.msra.gmra.mrb[28].mxu1 %vm999_vm1, %v1330_v15 }
 0x7b8   : > { %2493 = vmatprep.mubr.msk.bf16.mxu1 %vm2990_vm0, %v2989_v3 }
 0x882   : > { %v3249_v22 = vpop.f32.mrb[24].mxu1 }
 0x883   : > { %v2483_v12 = vpop.f32.mrb[25].mxu1 }
 0x884   : > { %v1326_v16 = vpop.f32.mrb[26].mxu1 }
 0x885   : > { %v2484_v17 = vpop.f32.mrb[27].mxu1 }
 0x88a   : > { %v1373_v18 = vpop.f32.mrb[28].mxu1 }
 0x88b   : > { %v2489_v20 = vpop.f32.mrb[29].mxu1  ;;  %v1379_v21 = vsel %vm1046_vm2, %v1373_v18, -inf }
 0x88c   : > { %1380 = vmax.xlane.f32.xlu0 %v1379_v21  ;;  %v1376_v23 = vpop.f32.mrb[30].mxu1 }
 0x88d   : > { %v2490_v24 = vpop.f32.mrb[31].mxu1 }
 0x8a2   : > { %1391 = vrot.lane.b32.xlu0 %v3196_v14, %s2993_s16  ;;  %v368_v14 = vrot.slane %v3163_v7, %v367_v33  ;;  %v1501_v7 = vsel %vm1062_vm3, %v3276_v46, 0 }
 0x8a4   : > { %v948_v35 = vadd.f32 %v3170_v13, %v368_v14 }
 0x8a6   : > { %v3262_v39 = vpack.c.bf16 %v948_v35, %v948_v35 }
 0x8a8   : > { %v1443_v13 = vsel %vm999_vm1, %v3262_v39, 0 }
 0x919   : > { %v1381_v25 = vpop.xlane.xlu0 %1380 }
 0x91a   : > { %v1382_v27 = vsub.f32 %v1373_v18, %v1381_v25 }
 0x91c   : > { %v1383_v28 = vmul.f32 1.442695, %v1382_v27 }
 0x91d   : > { %v1392_v29 = vpop.permute.xlu0 %1391 }
 0x91e   : > { %2835 = vpow2.f32 %v1383_v28  ;;  %v1397_v30 = vsel %vm1062_vm3, %v1392_v29, 0 }
 0x91f   : > { %2492 = vmatpush3.bf16.msra.mxu1 %v1397_v30 }
 0x920   : > { %2497 = vmatprep.subr.bf16.mxu1 %v2989_v3 }
 0x928   : > { %v2836_v31 = vpop.eup %2835 }
 0x929   : > { %v1385_v32 = vsel %vm1046_vm2, %v2836_v31, 0.0 }
 0x92a   : > { %1386 = vadd.xlane.f32.xlu1 %v1385_v32 }
 0x9b7   : > { %v1387_v34 = vpop.xlane.xlu1 %1386 }
 0x9b8   : > { %2837 = vrcp.f32 %v1387_v34 }
 0x9c2   : > { %v2838_v38 = vpop.eup %2837 }
 0x9c3   : > { %v1389_v41 = vmul.f32 %v2838_v38, %v2836_v31 }
 0x9c5   : > { %v1390_v43 = vpack.c.bf16 %v1389_v41, %v1389_v41 }
 0x9c7   : > { %2494 = vmatmul.mubr.msk.bf16.vlgmr.msra.gmra.mrb[32].mxu1 %vm1046_vm2, %v1390_v43 }
 0x9c8   : > { %2498 = vmatpush3.bf16.xpose.msra.mxu1 %v1443_v13  ;;  %2499 = vmatprep.mubr.msk.bf16.mxu1 %vm2990_vm0, %v2989_v3 }
 0x9c9   : > { %2503 = vmatprep.subr.bf16.mxu1 %v2989_v3 }
 0x9cf   : > { %2500 = vmatmul.mubr.msk.bf16.vlgmr.msra.gmra.mrb[36].mxu1 %vm999_vm1, %v3278_v47 }
 0x9d0   : > { %2504 = vmatpush3.bf16.msra.mxu1 %v1501_v7  ;;  %2505 = vmatprep.mubr.msk.bf16.mxu1 %vm2990_vm0, %v2989_v3 }
 0x9d1   : > { %2509 = vmatprep.subr.bf16.mxu1 %v2989_v3 }
 0xa9a   : > { %v3287_v1 = vpop.f32.mrb[32].mxu1 }
 0xa9b   : > { %v2495_v19 = vpop.f32.mrb[33].mxu1 }
 0xa9c   : > { %v1436_v48 = vpop.f32.mrb[34].mxu1 }
 0xa9d   : > { %v2496_v49 = vpop.f32.mrb[35].mxu1 }
 0xaa2   : > { %v1479_v50 = vpop.f32.mrb[36].mxu1 }
 0xaa3   : > { %v2501_v52 = vpop.f32.mrb[37].mxu1  ;;  %v1485_v53 = vsel %vm1046_vm2, %v1479_v50, -inf }
 0xaa4   : > { %1486 = vmax.xlane.f32.xlu0 %v1485_v53  ;;  %v1482_v54 = vpop.f32.mrb[38].mxu1 }
 0xaa5   : > { %v2502_v55 = vpop.f32.mrb[39].mxu1 }
 0xaba   : > { %1544 = vrot.lane.b32.xlu0 %v3278_v47, %s2991_s14 }
 0xb31   : > { %v1487_v56 = vpop.xlane.xlu0 %1486 }
 0xb32   : > { %v1488_v57 = vsub.f32 %v1479_v50, %v1487_v56 }
 0xb34   : > { %v1489_v58 = vmul.f32 1.442695, %v1488_v57 }
 0xb35   : > { %v1545_v9 = vpop.permute.xlu0 %1544 }
 0xb36   : > { %2839 = vpow2.f32 %v1489_v58 }
 0xb40   : > { %v2840_v59 = vpop.eup %2839 }
 0xb41   : > { %v1491_v60 = vsel %vm1046_vm2, %v2840_v59, 0.0 }
 0xb42   : > { %1492 = vadd.xlane.f32.xlu1 %v1491_v60 }
 0xb53   : > { %1547 = vrot.lane.b32.xlu1 %v3262_v39, %s2991_s14 }
 0xbcf   : > { %v1493_v61 = vpop.xlane.xlu1 %1492 }
 0xbd0   : > { %2841 = vrcp.f32 %v1493_v61 }
 0xbd3   : > { %v1548_v0 = vpop.permute.xlu1 %1547 }
 0xbd4   : > { %v1553_v6 = vsel %vm999_vm1, %v1548_v0, 0 }
 0xbda   : > { %v2842_v62 = vpop.eup %2841 }
 0xbdb   : > { %v1495_v63 = vmul.f32 %v2842_v62, %v2840_v59 }
 0xbdd   : > { %v1496_v4 = vpack.c.bf16 %v1495_v63, %v1495_v63 }
 0xbdf   : > { %2506 = vmatmul.mubr.msk.bf16.vlgmr.msra.gmra.mrb[40].mxu1 %vm1046_vm2, %v1496_v4 }
 0xbe0   : > { %2510 = vmatpush3.bf16.xpose.msra.mxu1 %v1553_v6  ;;  %2511 = vmatprep.mubr.msk.bf16.mxu1 %vm2990_vm0, %v2989_v3 }
 0xbe1   : > { %2515 = vmatprep.subr.bf16.mxu1 %v2989_v3 }
 0xbe7   : > { %2512 = vmatmul.mubr.msk.bf16.vlgmr.msra.gmra.mrb[44].mxu1 %vm999_vm1, %v1545_v9 }
 0xbe8   : > { %2517 = vmatprep.mubr.msk.bf16.mxu1 %vm2990_vm0, %v2989_v3 }
 0xcb2   : > { %v3303_v2 = vpop.f32.mrb[40].mxu1 }
 0xcb3   : > { %v2507_v10 = vpop.f32.mrb[41].mxu1 }
 0xcb4   : > { %v1540_v11 = vpop.f32.mrb[42].mxu1 }
 0xcb5   : > { %v2508_v15 = vpop.f32.mrb[43].mxu1 }
 0xcba   : > { %v1589_v12 = vpop.f32.mrb[44].mxu1 }
 0xcbb   : > { %v2513_v16 = vpop.f32.mrb[45].mxu1  ;;  %v1595_v17 = vsel %vm1046_vm2, %v1589_v12, -inf }
 0xcbc   : > { %1596 = vmax.xlane.f32.xlu1 %v1595_v17  ;;  %v1592_v18 = vpop.f32.mrb[46].mxu1 }
 0xcbd   : > { %v2514_v20 = vpop.f32.mrb[47].mxu1 }
 0xccd   : > { %1608 = vrot.lane.b32.xlu1 %v3276_v46, %s2991_s14 }
 0xcd1   : > { %1656 = vrot.lane.b32.xlu1 %v3278_v47, %s2992_s15 }
 0xd49   : > { %v1597_v21 = vpop.xlane.xlu1 %1596 }
 0xd4a   : > { %v1598_v23 = vsub.f32 %v1589_v12, %v1597_v21 }
 0xd4c   : > { %v1599_v24 = vmul.f32 1.442695, %v1598_v23  ;;  %v2775_v23 = vld [vmem:[#allocation5] ss:$8 sps:$4 sm:$0xff]  }
 0xd4d   : > { %v1609_v25 = vpop.permute.xlu1 %1608 }
 0xd4e   : > { %2843 = vpow2.f32 %v1599_v24  ;;  %v1614_v27 = vsel %vm1062_vm3, %v1609_v25, 0  ;;  %v2777_v24 = vld [vmem:[#allocation5 + $0x4] ss:$8 sps:$4 sm:$0xff]   ;;  %v2780_v25 = vld [vmem:[#allocation5 + $0x14] ss:$8 sps:$4 sm:$0xff]  }
 0xd4f   : > { %2516 = vmatpush3.bf16.msra.mxu1 %v1614_v27  ;;  %2114 = vmatprep.subr.bf16.mxu0 %v2777_v24  ;;  %v2778_v27 = vld [vmem:[#allocation5 + $0x10] ss:$8 sps:$4 sm:$0xff]  }
 0xd50   : > { %2521 = vmatprep.subr.bf16.mxu1 %v2989_v3  ;;  %2115 = vmatpush1.bf16.msra.mxu0 %v2775_v23 }
 0xd51   : > { %v1657_v35 = vpop.permute.xlu1 %1656  ;;  %2116 = vmatprep.subr.bf16.mxu0 %v2780_v25 }
 0xd54   : > { %2117 = vmatpush1.bf16.msra.mxu0 %v2778_v27 }
 0xd58   : > { %v2844_v28 = vpop.eup %2843 }
 0xd59   : > { %v1601_v29 = vsel %vm1046_vm2, %v2844_v28, 0.0 }
 0xd5a   : > { %1602 = vadd.xlane.f32.xlu0 %v1601_v29  ;;  %v2781_v29 = vld [vmem:[#allocation5 + $0x20] ss:$8 sps:$4 sm:$0xff]  }
 0xd70   : > { %1658 = vrot.lane.b32.xlu0 %v3262_v39, %s2992_s15 }
 0xde7   : > { %v1603_v30 = vpop.xlane.xlu0 %1602 }
 0xde8   : > { %2845 = vrcp.f32 %v1603_v30  ;;  %v2786_v30 = vld [vmem:[#allocation5 + $0x34] ss:$8 sps:$4 sm:$0xff]  }
 0xdeb   : > { %v1659_v33 = vpop.permute.xlu0 %1658 }
 0xdec   : > { %v1664_v14 = vsel %vm999_vm1, %v1659_v33, 0  ;;  %v2787_v33 = vld [vmem:[#allocation5 + $0x40] ss:$8 sps:$4 sm:$0xff]  }
 0xdf2   : > { %v2846_v31 = vpop.eup %2845 }
 0xdf3   : > { %v1605_v32 = vmul.f32 %v2846_v31, %v2844_v28  ;;  %v2783_v28 = vld [vmem:[#allocation5 + $0x24] ss:$8 sps:$4 sm:$0xff]   ;;  %v2784_v31 = vld [vmem:[#allocation5 + $0x30] ss:$8 sps:$4 sm:$0xff]  }
 0xdf4   : > { %2118 = vmatprep.subr.bf16.mxu0 %v2783_v28 }
 0xdf5   : > { %v1606_v34 = vpack.c.bf16 %v1605_v32, %v1605_v32  ;;  %2119 = vmatpush1.bf16.msra.mxu0 %v2781_v29  ;;  %v2789_v32 = vld [vmem:[#allocation5 + $0x44] ss:$8 sps:$4 sm:$0xff]  }
 0xdf6   : > { %2120 = vmatprep.subr.bf16.mxu0 %v2786_v30 }
 0xdf7   : > { %2518 = vmatmul.mubr.msk.bf16.vlgmr.msra.gmra.mrb[48].mxu1 %vm1046_vm2, %v1606_v34  ;;  %v2792_v34 = vld [vmem:[#allocation5 + $0x54] ss:$8 sps:$4 sm:$0xff]  }
 0xdf8   : > { %2522 = vmatpush3.bf16.xpose.msra.mxu1 %v1664_v14  ;;  %2523 = vmatprep.mubr.msk.bf16.mxu1 %vm2990_vm0, %v2989_v3  ;;  %v2790_v14 = vld [vmem:[#allocation5 + $0x50] ss:$8 sps:$4 sm:$0xff]  }
 0xdf9   : > { %2527 = vmatprep.subr.bf16.mxu1 %v2989_v3  ;;  %2121 = vmatpush1.bf16.msra.mxu0 %v2784_v31 }
 0xdfa   : > { %2122 = vmatprep.subr.bf16.mxu0 %v2789_v32 }
 0xdfd   : > { %2123 = vmatpush1.bf16.msra.mxu0 %v2787_v33 }
 0xdfe   : > { %2124 = vmatprep.subr.bf16.mxu0 %v2792_v34 }
 0xdff   : > { %2524 = vmatmul.mubr.msk.bf16.vlgmr.msra.gmra.mrb[52].mxu1 %vm999_vm1, %v1657_v35  ;;  %v2795_v35 = vld [vmem:[#allocation5 + $0x64] ss:$8 sps:$4 sm:$0xff]  }
 0xe00   : > { %2529 = vmatprep.mubr.msk.bf16.mxu1 %vm2990_vm0, %v2989_v3 }
 0xe01   : > { %2125 = vmatpush1.bf16.msra.mxu0 %v2790_v14 }
 0xe02   : > { %2126 = vmatprep.subr.bf16.mxu0 %v2795_v35 }
 0xeca   : > { %v1650_v36 = vpop.f32.mrb[48].mxu1 }
 0xecb   : > { %v2614_v38 = vpack.i.bf16 %v3233_v51, %v1650_v36  ;;  %v2519_v40 = vpop.f32.mrb[49].mxu1  ;;  %v2793_v36 = vld [vmem:[#allocation5 + $0x60] ss:$8 sps:$4 sm:$0xff]  }
 0xecc   : > { %v1653_v41 = vpop.f32.mrb[50].mxu1  ;;  %2127 = vmatpush1.bf16.msra.mxu0 %v2793_v36  ;;  %v2796_v40 = vld [vmem:[#allocation5 + $0x70] ss:$8 sps:$4 sm:$0xff]  }
 0xecd   : > { %v2520_v42 = vpop.f32.mrb[51].mxu1  ;;  %v2801_v41 = vld [vmem:[#allocation5 + $0x84] ss:$8 sps:$4 sm:$0xff]  }
 0xece   : > { %v2799_v42 = vld [vmem:[#allocation5 + $0x80] ss:$8 sps:$4 sm:$0xff]  }
 0xed2   : > { %v1700_v43 = vpop.f32.mrb[52].mxu1 }
 0xed3   : > { %v2525_v44 = vpop.f32.mrb[53].mxu1  ;;  %v1706_v13 = vsel %vm1046_vm2, %v1700_v43, -inf }
 0xed4   : > { %1707 = vmax.xlane.f32.xlu1 %v1706_v13  ;;  %v1703_v45 = vpop.f32.mrb[54].mxu1  ;;  %v2802_v44 = vld [vmem:[#allocation5 + $0x90] ss:$8 sps:$4 sm:$0xff]   ;;  %v2807_v13 = vld [vmem:[#allocation5 + $0xa4] ss:$8 sps:$4 sm:$0xff]  }
 0xed5   : > { %v2526_v7 = vpop.f32.mrb[55].mxu1  ;;  %v2805_v45 = vld [vmem:[#allocation5 + $0xa0] ss:$8 sps:$4 sm:$0xff]  }
 0xed6   : > { %v2810_v7 = vld [vmem:[#allocation5 + $0xb4] ss:$8 sps:$4 sm:$0xff]  }
 0xee5   : > { %1718 = vrot.lane.b32.xlu1 %v3276_v46, %s2992_s15 }
 0xee9   : > { %1766 = vrot.lane.b32.xlu1 %v3278_v47, %s2993_s16 }
 0xf61   : > { %v1708_v19 = vpop.xlane.xlu1 %1707 }
 0xf62   : > { %v1709_v48 = vsub.f32 %v1700_v43, %v1708_v19  ;;  %v2804_v43 = vld [vmem:[#allocation5 + $0x94] ss:$8 sps:$4 sm:$0xff]   ;;  %v2808_v19 = vld [vmem:[#allocation5 + $0xb0] ss:$8 sps:$4 sm:$0xff]  }
 0xf64   : > { %v1710_v49 = vmul.f32 1.442695, %v1709_v48  ;;  %v2813_v48 = vld [vmem:[#allocation5 + $0xc4] ss:$8 sps:$4 sm:$0xff]  }
 0xf65   : > { %v1719_v51 = vpop.permute.xlu1 %1718 }
 0xf66   : > { %2847 = vpow2.f32 %v1710_v49  ;;  %v1724_v50 = vsel %vm1062_vm3, %v1719_v51, 0  ;;  %v2811_v49 = vld [vmem:[#allocation5 + $0xc0] ss:$8 sps:$4 sm:$0xff]   ;;  %v2816_v51 = vld [vmem:[#allocation5 + $0xd4] ss:$8 sps:$4 sm:$0xff]  }
 0xf67   : > { %2528 = vmatpush3.bf16.msra.mxu1 %v1724_v50  ;;  %v2814_v50 = vld [vmem:[#allocation5 + $0xd0] ss:$8 sps:$4 sm:$0xff]  }
 0xf68   : > { %2533 = vmatprep.subr.bf16.mxu1 %v2989_v3 }
 0xf69   : > { %v1767_v59 = vpop.permute.xlu1 %1766 }
 0xf70   : > { %v2848_v52 = vpop.eup %2847 }
 0xf71   : > { %v1712_v53 = vsel %vm1046_vm2, %v2848_v52, 0.0 }
 0xf72   : > { %1713 = vadd.xlane.f32.xlu0 %v1712_v53  ;;  %v2817_v53 = vld [vmem:[#allocation5 + $0xe0] ss:$8 sps:$4 sm:$0xff]  }
 0xf88   : > { %1768 = vrot.lane.b32.xlu0 %v3262_v39, %s2993_s16 }
 0xfff   : > { %v1714_v54 = vpop.xlane.xlu0 %1713 }
0x1000   : > { %2849 = vrcp.f32 %v1714_v54  ;;  %v2822_v54 = vld [vmem:[#allocation5 + $0xf4] ss:$8 sps:$4 sm:$0xff]  }
0x1003   : > { %v1769_v56 = vpop.permute.xlu0 %1768 }
0x1004   : > { %v1774_v58 = vsel %vm999_vm1, %v1769_v56, 0 }
0x100a   : > { %v2850_v47 = vpop.eup %2849 }
0x100b   : > { %v1716_v55 = vmul.f32 %v2850_v47, %v2848_v52  ;;  %v2819_v52 = vld [vmem:[#allocation5 + $0xe4] ss:$8 sps:$4 sm:$0xff]   ;;  %v2820_v47 = vld [vmem:[#allocation5 + $0xf0] ss:$8 sps:$4 sm:$0xff]  }
0x100d   : > { %v1717_v57 = vpack.c.bf16 %v1716_v55, %v1716_v55 }
0x100f   : > { %2530 = vmatmul.mubr.msk.bf16.vlgmr.msra.gmra.mrb[56].mxu1 %vm1046_vm2, %v1717_v57 }
0x1010   : > { %2534 = vmatpush3.bf16.xpose.msra.mxu1 %v1774_v58  ;;  %2535 = vmatprep.mubr.msk.bf16.mxu1 %vm2990_vm0, %v2989_v3 }
0x1011   : > { %2539 = vmatprep.subr.bf16.mxu1 %v2989_v3 }
0x1017   : > { %2536 = vmatmul.mubr.msk.bf16.vlgmr.msra.gmra.mrb[60].mxu1 %vm999_vm1, %v1767_v59 }
0x1018   : > { %2541 = vmatprep.mubr.msk.bf16.mxu1 %vm2990_vm0, %v2989_v3 }
0x10e2   : > { %v1760_v39 = vpop.f32.mrb[56].mxu1 }
0x10e3   : > { %v2619_v60 = vpack.i.bf16 %v3249_v22, %v1760_v39  ;;  %v2531_v61 = vpop.f32.mrb[57].mxu1 }
0x10e4   : > { %v1763_v62 = vpop.f32.mrb[58].mxu1 }
0x10e5   : > { %v2532_v63 = vpop.f32.mrb[59].mxu1 }
0x10ea   : > { %v1810_v0 = vpop.f32.mrb[60].mxu1 }
0x10eb   : > { %v2537_v4 = vpop.f32.mrb[61].mxu1  ;;  %v1816_v6 = vsel %vm1046_vm2, %v1810_v0, -inf }
0x10ec   : > { %1817 = vmax.xlane.f32.xlu1 %v1816_v6  ;;  %v1813_v9 = vpop.f32.mrb[62].mxu1 }
0x10ed   : > { %v2538_v10 = vpop.f32.mrb[63].mxu1 }
0x10fd   : > { %1828 = vrot.lane.b32.xlu1 %v3276_v46, %s2993_s16 }
0x1101   : > { %2620 = vrot.lane.b32.xlu1 %v2619_v60, %s2992_s15 }
0x1179   : > { %v1818_v11 = vpop.xlane.xlu1 %1817 }
0x117a   : > { %v1819_v3 = vsub.f32 %v1810_v0, %v1818_v11 }
0x117c   : > { %v1820_v15 = vmul.f32 1.442695, %v1819_v3 }
0x117d   : > { %v1829_v12 = vpop.permute.xlu1 %1828 }
0x117e   : > { %2851 = vpow2.f32 %v1820_v15  ;;  %v1834_v22 = vsel %vm1062_vm3, %v1829_v12, 0 }
0x117f   : > { %2540 = vmatpush3.bf16.msra.mxu1 %v1834_v22 }
0x1181   : > { %v2621_v62 = vpop.permute.xlu1 %2620 }
0x1182   : > { %v2623_v4 = vunpack.i.h.bf16 %v2621_v62  ;;  %v2622_v6 = vunpack.i.l.bf16 %v2621_v62 }
0x1188   : > { %v2852_v16 = vpop.eup %2851 }
0x1189   : > { %v1822_v17 = vsel %vm1046_vm2, %v2852_v16, 0.0 }
0x118a   : > { %1823 = vadd.xlane.f32.xlu0 %v1822_v17 }
0x11a0   : > { %2615 = vrot.lane.b32.xlu0 %v2614_v38, %s2993_s16  ;;  %v2798_v38 = vld [vmem:[#allocation5 + $0x74] ss:$8 sps:$4 sm:$0xff]  }
0x11a1   : > { %2128 = vmatprep.subr.bf16.mxu0 %v2798_v38 }
0x11a2   : > { %2129 = vmatpush1.bf16.msra.mxu0 %v2796_v40 }
0x11a3   : > { %2130 = vmatprep.subr.bf16.mxu0 %v2801_v41 }
0x11a6   : > { %2131 = vmatpush1.bf16.msra.mxu0 %v2799_v42 }
0x11a7   : > { %2132 = vmatprep.subr.bf16.mxu0 %v2804_v43 }
0x11aa   : > { %2133 = vmatpush1.bf16.msra.mxu0 %v2802_v44 }
0x11ab   : > { %2134 = vmatprep.subr.bf16.mxu0 %v2807_v13 }
0x11ae   : > { %2135 = vmatpush1.bf16.msra.mxu0 %v2805_v45 }
0x11af   : > { %2136 = vmatprep.subr.bf16.mxu0 %v2810_v7 }
0x11b2   : > { %2137 = vmatpush1.bf16.msra.mxu0 %v2808_v19 }
0x11b3   : > { %2138 = vmatprep.subr.bf16.mxu0 %v2813_v48 }
0x11b6   : > { %2139 = vmatpush1.bf16.msra.mxu0 %v2811_v49 }
0x11b7   : > { %2140 = vmatprep.subr.bf16.mxu0 %v2816_v51 }
0x11ba   : > { %2141 = vmatpush1.bf16.msra.mxu0 %v2814_v50 }
0x11bb   : > { %2142 = vmatprep.subr.bf16.mxu0 %v2819_v52 }
0x11be   : > { %2143 = vmatpush1.bf16.msra.mxu0 %v2817_v53 }
0x11bf   : > { %2144 = vmatprep.subr.bf16.mxu0 %v2822_v54 }
0x11c2   : > { %2145 = vmatpush1.bf16.msra.mxu0 %v2820_v47 }
0x1217   : > { %v1824_v18 = vpop.xlane.xlu0 %1823 }
0x1218   : > { %2853 = vrcp.f32 %v1824_v18 }
0x121b   : > { %v2616_v39 = vpop.permute.xlu0 %2615 }
0x121c   : > { %v2618_v60 = vunpack.i.h.bf16 %v2616_v39  ;;  %v2617_v61 = vunpack.i.l.bf16 %v2616_v39 }
0x121e   : > { %v1900_v63 = vsel %vm999_vm1, %v3209_v26, %v2618_v60  ;;  %v1905_v0 = vsel %vm999_vm1, %v3303_v2, %v2617_v61  ;;  %v1942_v26 = vld [vmem:[%s3415_s4] sm:$0x3] }
0x121f   : > { %v1902_v11 = vsel %vm1901_vm4, %v1900_v63, %v2623_v4  ;;  %v1906_v3 = vsel %vm1901_vm4, %v1905_v0, %v2622_v6  ;;  %v1947_v2 = vrot.slane %v1942_v26, %v355_v8  ;;  %v1951_v17 = vrot.slane %v1942_v26, %v359_v37 }
0x1222   : > { %v2854_v20 = vpop.eup %2853 }
0x1223   : > { %v1826_v46 = vmul.f32 %v2854_v20, %v2852_v16 }
0x1225   : > { %v1827_v21 = vpack.c.bf16 %v1826_v46, %v1826_v46 }
0x1227   : > { %2542 = vmatmul.mubr.msk.bf16.vlgmr.msra.gmra.mrb[64].mxu1 %vm1046_vm2, %v1827_v21 }
0x12fa   : > { %v1870_v55 = vpop.f32.mrb[64].mxu1 }
0x12fb   : > { %v2624_v56 = vpack.i.bf16 %v3287_v1, %v1870_v55  ;;  %v2543_v57 = vpop.f32.mrb[65].mxu1 }
0x12fc   : > { %v1873_v58 = vpop.f32.mrb[66].mxu1 }
0x12fd   : > { %2625 = vrot.lane.b32.xlu1 %v2624_v56, %s2991_s14  ;;  %v2544_v59 = vpop.f32.mrb[67].mxu1  ;;  %s2917_s14 = scalar_lea.vmem %s2916_s13, 512 }
0x12fe   : > { %p2919_p7 = scmp.lt.s32.totalorder %s2917_s14, %s2911_s11 }
0x1300   : > { %p2920_p8 = por %p2919_p7, %p2918_p4 }
0x1302   : > { %p2921_p11 = pnand %p2920_p8, %p2914_p3 }
0x136f   : > { %v2626_v1 = vpop.permute.xlu1 %2625 }
0x1370   : > { %v2628_v9 = vunpack.i.h.bf16 %v2626_v1  ;;  %v2627_v10 = vunpack.i.l.bf16 %v2626_v1 }
0x1372   : > { %v1904_v15 = vsel %vm1903_vm5, %v1902_v11, %v2628_v9  ;;  %v1907_v12 = vsel %vm1903_vm5, %v1906_v3, %v2627_v10 }
0x1373   : > { %v1908_v22 = vpack.c.bf16 %v1904_v15, %v1904_v15  ;;  %v1909_v16 = vpack.c.bf16 %v1907_v12, %v1907_v12 }
0x1375   : > { %2146 = vmatprep.mubr.bf16.mxu0 %v1909_v16 }
0x1376   : > { %2147 = vmatmul.mubr.bf16.vlgmr.msra.gmra.mrb[8].mxu0 %v1908_v22 }
0x1449   : > { %v2148_v18 = vpop.f32.mrb[8].mxu0 }
0x144a   : > { %v2149_v20 = vadd.f32 %v2148_v18, %v1947_v2  ;;  %v2150_v46 = vpop.f32.mrb[9].mxu0 }
0x144b   : > { %v2151_v21 = vadd.f32 %v2150_v46, %v1951_v17  ;;  %v2152_v23 = vpop.f32.mrb[10].mxu0 }
0x144c   : > { %2155 = vst [vmem:[%s247_s6] sm:$0xff] %v2149_v20  ;;  %v2153_v5 = vpop.f32.mrb[11].mxu0 }
0x144d   : > { %2156 = vst [vmem:[%s247_s6 + $0x8] sm:$0xff] %v2151_v21 }
0x144e   : > { %2924 = shalt.err (!%p2921_p11)
}
0x144f   : > { %s2925_s15 = scalar_lea.hbm %s3369_s9, 256  ;;  %s2929_s7 = scalar_lea.hbm %s3416_s5, 512 }
0x1450   : > { %p2926_p13 = scmp.ne.s32.totalorder %s3369_s9, %s2925_s15  ;;  %p2930_p6 = scmp.lt.u32.totalorder %s3369_s9, %s3416_s5 }
0x1451   : > { %p2931_p9 = scmp.lt.u32.totalorder %s2929_s7, %s2925_s15  ;;  %p2933_p10 = scmp.lt.u32.totalorder %s2925_s15, %s3369_s9 }
0x1452   : > { %p2927_p0 = pnand %p2926_p13, %p3429_p1 }
0x1453   : > { %p2932_p12 = por %p2931_p9, %p2930_p6 }
0x1454   : > { %p2928_p5 = pneg %p2927_p0 }
0x1455   : > { %p2934_p2 = por %p2933_p10, %p2932_p12 }
0x1457   : > { %p2935_p3 = pnand %p2934_p2, %p2928_p5 }
0x1459   : > { %2938 = shalt.err (!%p2935_p3)
}
0x145a   : > { %2553 = dma.vmem_to_hbm [thread:$0]  (%p3429_p1), %s3371_s30, 256, %s3369_s9, %s2158_s22  }
0x145b PF: > { %p2570_p4 = scmp.ge.s32.totalorder %s2981_s21, 2  ;;  %s2184_s26 = sand.u32 1, %s2969_s18  }
0x145c   : > { %p3430_p7 = scmp.ne.s32.totalorder %s3421_s29, 0  ;;  %s2185_s6 = scalar_lea.sflag [#allocation4], %s2184_s26 }
0x145e   : > { %p2563_p8 = pnand %p2570_p4, %p3430_p7 }
0x1460   : > { %2964 = dma.done.wait (!%p2563_p8), %s2185_s6, 256  }
0x1461   : > { %2966 = vsyncadd (!%p2563_p8), %s2185_s6, 4294967040  ;;  %p17_p11 = scmp.ge.s32.totalorder %s3050_s24, 4   ;;  %s3431_s18 = smov %s2973_s19 }
0x1462   : > { %s3432_s19 = smov %s2977_s20  ;;  %s3433_s20 = smov %s3061_s27 }
0x1463   : > { %s3434_s21 = smov %s3050_s24  ;;  %19 = sbr.rel (!%p17_p11) target bundleno = 5 (0x5), region = 84 }
0x146a   :  { %2190 = vsyncpa [#allocation3], 1 }
0x146b   :  { %2192 = vsyncpa [#allocation3 + $0x1], 1 }
0x146c   :  { %2193 = vsyncpa [#allocation6], 1 }
0x146d   :  { %2194 = vsyncpa [#allocation4], 1 }
0x146e   :  { %2196 = vsyncpa [#allocation4 + $0x1], 1 }

</bundles_post_ra>
